<compile_context>
chip_gen: v5e
topology: v5e:2x2
jax: 0.10.0
libtpu: 0.0.40
codegen_flags: <defaults>
</compile_context>

<pallas_src>
import jax
import jax.numpy as jnp
from jax.experimental import pallas as pl
from jax.experimental.pallas import tpu as pltpu

BN_EPS = 1e-5
NEG_FILL = -1e30      # logit filler for padded class columns (exp -> 0)
LANE = 128
ROW_PAD = 256         # pad N so 256-row MXU tiles always divide n_pad

# pl.Buffered(1) single-buffering of grid-invariant operands; flipped off
# automatically if the installed JAX / Mosaic rejects pipeline_mode.
_SINGLE_BUFFER = True


# ------------------------------ helpers -------------------------------------
def _round_up(x, m):
    return ((x + m - 1) // m) * m


def _vmem_capacity_bytes():
    """Generation-aware physical VMEM (v5e/v6e: 128 MiB, v7x: 64 MiB)."""
    try:
        cap = int(pltpu.get_tpu_info().vmem_capacity_bytes)
        if cap > 0:
            return cap
    except Exception:
        pass
    return 64 << 20   # conservative (v7x-sized) default


def _need_bytes(tm, tk, c_in, c_out, out_bytes):
    """Conservative VMEM estimate: every input/output counted double-buffered,
    plus the f32 accumulator scratch and f32 epilogue temporaries."""
    a_b = 2 * tm * tk * 2                      # bf16 A_hat row tile (double buffered)
    h_b = 2 * tk * c_in * 2                    # bf16 H block
    w_b = 2 * c_in * c_out * 2                 # bf16 W (x2 even if Buffered(1))
    bias = 2 * c_out * 4
    o_b = 2 * tm * c_out * out_bytes
    acc = tm * c_in * 4                        # f32 accumulator scratch
    tmp = 2 * tm * c_out * 4 + tm * c_in * 4   # f32 z / softmax temporaries
    return a_b + h_b + w_b + bias + o_b + acc + tmp + (2 << 20)


def _pick_tiles(n_pad, c_in, c_out, out_bytes, budget):
    """Maximize the row tile TM first (biggest lever for the HBM-bound A_hat
    stream), then the contraction tile TK.  TK == n_pad means no K-split: H is
    fetched once and stays VMEM-resident."""
    tm_cands = [t for t in (1024, 512, 256, 128, 64, 32, 16)
                if n_pad % t == 0 and (n_pad <= 256 or t <= n_pad // 2)]
    tk_cands = sorted({t for t in (n_pad, 32768, 16384, 8192, 4096,
                                   2048, 1024, 512, 256)
                       if t <= n_pad and n_pad % t == 0}, reverse=True)
    for tm in tm_cands:
        for tk in tk_cands:
            if _need_bytes(tm, tk, c_in, c_out, out_bytes) <= budget:
                return tm, tk
    return tm_cands[-1], tk_cands[-1]


# ----------------------------- Pallas kernel ---------------------------------
def _make_fused_kernel(apply_relu, num_heads, head_pad):
    def kernel(a_ref, h_ref, w_ref, b_ref, o_ref, acc_ref):
        k = pl.program_id(1)

        @pl.when(k == 0)
        def _():
            acc_ref[...] = jnp.zeros_like(acc_ref)

        # Dominant product: A_hat[row tile] @ H[k block]  (bf16 MXU, f32 acc).
        acc_ref[...] += jnp.dot(a_ref[...], h_ref[...],
                                preferred_element_type=jnp.float32)

        @pl.when(k == pl.num_programs(1) - 1)
        def _():
            # Fused feature transform + bias epilogue.  All math in f32 vregs;
            # cast only at the lane-dense store (v5e has no bf16 VPU/EUP).
            z = jnp.dot(acc_ref[...].astype(w_ref.dtype), w_ref[...],
                        preferred_element_type=jnp.float32) + b_ref[...]
            if apply_relu:
                # BN already folded into W/b in glue; only the activation left.
                o_ref[...] = jnp.maximum(z, 0.0).astype(o_ref.dtype)
            else:
                # Per-head log_softmax over its 128-lane class block; padded
                # columns carry NEG_FILL bias so exp() underflows to 0.
                for hd in range(num_heads):
                    zh = z[:, hd * head_pad:(hd + 1) * head_pad]
                    m = jnp.max(zh, axis=1, keepdims=True)
                    s = zh - m
                    lse = jnp.log(jnp.sum(jnp.exp(s), axis=1, keepdims=True))
                    o_ref[:, hd * head_pad:(hd + 1) * head_pad] = \
                        (s - lse).astype(o_ref.dtype)
    return kernel


def _maybe_buffered_spec(shape, index_map, single_buffer):
    if single_buffer:
        return pl.BlockSpec(shape, index_map, pipeline_mode=pl.Buffered(1))
    return pl.BlockSpec(shape, index_map)


def fused_gcn_layer(a_pad, h, w, b, *, relu, num_heads=1, head_pad=None,
                    out_dtype=jnp.bfloat16, tile_override=None):
    """One fused GCN layer for all heads:  epilogue( (A_hat @ H) @ W + b )."""
    global _SINGLE_BUFFER
    n_pad = a_pad.shape[0]
    c_in = h.shape[1]
    c_out = w.shape[1]
    if head_pad is None:
        head_pad = c_out
    out_bytes = jnp.dtype(out_dtype).itemsize

    cap = _vmem_capacity_bytes()
    budget = int(0.75 * cap)                 # ~96 MiB on v5e/v6e, ~48 MiB on v7x
    if tile_override is not None:
        tm, tk = tile_override
        assert n_pad % tm == 0 and n_pad % tk == 0
    else:
        tm, tk = _pick_tiles(n_pad, c_in, c_out, out_bytes, budget)
    kk = n_pad // tk
    vmem_limit = int(min(max(2 * _need_bytes(tm, tk, c_in, c_out, out_bytes),
                             32 << 20), 0.9 * cap))

    def build(single_buffer):
        in_specs = [
            # A_hat row tile: the only operand streamed from HBM every step.
            pl.BlockSpec((tm, tk), lambda i, k: (i, k)),
            # H: resident when kk == 1 (index never changes -> single buffer);
            # streamed over k blocks (default double-buffering) otherwise.
            _maybe_buffered_spec((tk, c_in), lambda i, k: (k, 0),
                                 single_buffer and kk == 1),
            # W and fused bias: grid-invariant -> single buffer.
            _maybe_buffered_spec((c_in, c_out), lambda i, k: (0, 0), single_buffer),
            _maybe_buffered_spec((1, c_out), lambda i, k: (0, 0), single_buffer),
        ]
        return pl.pallas_call(
            _make_fused_kernel(relu, num_heads, head_pad),
            out_shape=jax.ShapeDtypeStruct((n_pad, c_out), out_dtype),
            grid_spec=pltpu.PrefetchScalarGridSpec(
                num_scalar_prefetch=0,
                grid=(n_pad // tm, kk),            # reduction axis (k) last
                in_specs=in_specs,
                out_specs=pl.BlockSpec((tm, c_out), lambda i, k: (i, 0)),
                scratch_shapes=[pltpu.VMEM((tm, c_in), jnp.float32)],
            ),
            compiler_params=pltpu.CompilerParams(
                dimension_semantics=("parallel", "arbitrary"),
                vmem_limit_bytes=vmem_limit),
        )

    args = (a_pad, h, w, b)
    if _SINGLE_BUFFER:
        try:
            return build(True)(*args)
        except Exception:
            _SINGLE_BUFFER = False   # pipeline_mode unsupported -> default buffering
    return build(False)(*args)


# ------------------------------ glue (JAX) -----------------------------------
def build_normalized_adjacency(edge_index, num_nodes, n_pad=None,
                               dtype=jnp.bfloat16):
    """A_hat = D^{-1/2}(A + I)D^{-1/2} matching PyG gcn_norm with
    add_remaining_self_loops (existing self-loop weights preserved), built
    directly at padded size and cast once to the MXU streaming dtype.
    Build once per graph and reuse across forward calls."""
    if n_pad is None:
        n_pad = num_nodes
    src, dst = edge_index
    a = jnp.zeros((n_pad, n_pad), jnp.float32).at[dst, src].add(1.0)
    idx = jnp.arange(num_nodes)
    diag = a[idx, idx]
    a = a.at[idx, idx].set(jnp.where(diag > 0.0, diag, 1.0))  # remaining self loops
    deg = jnp.sum(a, axis=1)
    d = jnp.where(deg > 0.0, jax.lax.rsqrt(jnp.maximum(deg, 1e-12)), 0.0)
    # bf16 A_hat halves the dominant HBM stream (~0.4% rel error / layer, well
    # inside tolerance).  TODO(synk): on v7x stream A_hat as fp8 e4m3 + scale.
    return (d[:, None] * a * d[None, :]).astype(dtype)


def glorot(key, shape):
    fan_in, fan_out = shape
    limit = (6.0 / (fan_in + fan_out)) ** 0.5
    return jax.random.uniform(key, shape, jnp.float32, -limit, limit)


def init_homo_gnn(key, in_channels, hidden_channels, out_channels, num_layers):
    layers = []
    c_in = in_channels
    for _ in range(num_layers):
        key, kw, km, kv = jax.random.split(key, 4)
        layers.append(dict(
            w=glorot(kw, (c_in, hidden_channels)),
            b=jnp.zeros((hidden_channels,), jnp.float32),
            gamma=jnp.ones((hidden_channels,), jnp.float32),
            beta=jnp.zeros((hidden_channels,), jnp.float32),
            mean=0.1 * jax.random.normal(km, (hidden_channels,), jnp.float32),
            var=1.0 + 0.1 * jax.random.uniform(kv, (hidden_channels,), jnp.float32),
        ))
        c_in = hidden_channels
    key, kw = jax.random.split(key)
    out = dict(w=glorot(kw, (hidden_channels, out_channels)),
               b=jnp.zeros((out_channels,), jnp.float32))
    return dict(layers=layers, out=out)


def pack_heads(head_params, head_names, in_channels, hidden_channels, num_layers):
    """Fuse the 3 heads: fold eval-mode BN into W/b and lay the per-head
    weights block-diagonally along 128-lane padded channel axes."""
    num_heads = len(head_names)
    c_in_pad = _round_up(in_channels, LANE)
    hid_tot = num_heads * hidden_channels
    hid_pad = _round_up(hid_tot, LANE)
    out_cs = [int(head_params[n]["out"]["w"].shape[1]) for n in head_names]
    cpad = _round_up(max(out_cs), LANE)
    out_tot = num_heads * cpad

    # TODO(synk): if hidden_channels grows large, split these block-diagonal
    # matmuls into per-head 128-lane slices to avoid MXU work on structural
    # zeros; negligible while the A_hat stream dominates.
    layer_ws, layer_bs = [], []
    for l in range(num_layers):
        c_prev_pad = c_in_pad if l == 0 else hid_pad
        w_all = jnp.zeros((c_prev_pad, hid_pad), jnp.float32)
        b_all = jnp.zeros((1, hid_pad), jnp.float32)
        for hd, name in enumerate(head_names):
            p = head_params[name]["layers"][l]
            s = p["gamma"] * jax.lax.rsqrt(p["var"] + BN_EPS)   # fold eval BN
            w_f = p["w"] * s[None, :]
            b_f = (p["b"] - p["mean"]) * s + p["beta"]
            rows = p["w"].shape[0]
            r0 = 0 if l == 0 else hd * hidden_channels
            c0 = hd * hidden_channels
            w_all = w_all.at[r0:r0 + rows, c0:c0 + hidden_channels].set(w_f)
            b_all = b_all.at[0, c0:c0 + hidden_channels].set(b_f)
        layer_ws.append(w_all.astype(jnp.bfloat16))
        layer_bs.append(b_all)                                  # bias stays f32

    w_out = jnp.zeros((hid_pad, out_tot), jnp.float32)
    b_out = jnp.full((1, out_tot), NEG_FILL, jnp.float32)       # pad logits
    for hd, name in enumerate(head_names):
        p = head_params[name]["out"]
        oc = out_cs[hd]
        w_out = w_out.at[hd * hidden_channels:(hd + 1) * hidden_channels,
                         hd * cpad:hd * cpad + oc].set(p["w"])
        b_out = b_out.at[0, hd * cpad:hd * cpad + oc].set(p["b"])

    return dict(layer_ws=layer_ws, layer_bs=layer_bs,
                w_out=w_out.astype(jnp.bfloat16), b_out=b_out,
                c_in_pad=c_in_pad, hid_pad=hid_pad, cpad=cpad,
                out_cs=out_cs, num_heads=num_heads)


def homo_mgnn_forward(x, a_pad, packed, num_layers, *, tile_override=None):
    """Fused HomoMGNN forward (inference).  `a_pad` is the bf16 padded
    normalized adjacency (built once per graph, reused across calls).
    Returns [artist, style, genre] log-probs."""
    n, f = x.shape
    n_pad = a_pad.shape[0]
    h = jnp.zeros((n_pad, packed["c_in_pad"]), jnp.bfloat16)
    h = h.at[:n, :f].set(x.astype(jnp.bfloat16))

    for l in range(num_layers):
        # GCNConv + folded eval-BN + ReLU: one fused pallas_call.
        h = fused_gcn_layer(a_pad, h, packed["layer_ws"][l], packed["layer_bs"][l],
                            relu=True, tile_override=tile_override)
        # TODO(synk): F.dropout is training-only (stochastic); inference
        # semantics implemented here.  skip=False -> no Linear skip branch.

    z = fused_gcn_layer(a_pad, h, packed["w_out"], packed["b_out"],
                        relu=False, num_heads=packed["num_heads"],
                        head_pad=packed["cpad"], out_dtype=jnp.float32,
                        tile_override=tile_override)

    return [z[:n, hd * packed["cpad"]: hd * packed["cpad"] + oc]
            for hd, oc in enumerate(packed["out_cs"])]


# --------------------------------- main --------------------------------------
if __name__ == "__main__":
    key = jax.random.PRNGKey(0)

    num_nodes = 40
    input_channels = 32
    hidden_channels = 16
    out_channels = {"artist": 8, "style": 12, "genre": 10}
    num_layers = 2
    num_edges = 160

    key, kx, ke_s, ke_d = jax.random.split(key, 4)
    x = jax.random.normal(kx, (num_nodes, input_channels), jnp.float32)
    edge_index = jnp.stack([
        jax.random.randint(ke_s, (num_edges,), 0, num_nodes),
        jax.random.randint(ke_d, (num_edges,), 0, num_nodes),
    ])

    head_names = ("artist", "style", "genre")
    head_params = {}
    for name in head_names:
        key, kh = jax.random.split(key)
        head_params[name] = init_homo_gnn(
            kh, input_channels, hidden_channels, out_channels[name], num_layers)

    packed = pack_heads(head_params, head_names, input_channels,
                        hidden_channels, num_layers)

    # A_hat built once (bf16, padded to a multiple of 256), reused across calls.
    n_pad = _round_up(num_nodes, ROW_PAD)
    a_pad = build_normalized_adjacency(edge_index, num_nodes, n_pad)

    outs = homo_mgnn_forward(x, a_pad, packed, num_layers)
    outs = [jax.block_until_ready(o) for o in outs]

    # Exercise the K-tiled accumulator path (forced small tiles) and cross-check
    # against the flat single-K run.
    outs_kt = homo_mgnn_forward(x, a_pad, packed, num_layers,
                                tile_override=(64, 64))
    outs_kt = [jax.block_until_ready(o) for o in outs_kt]
    for o1, o2 in zip(outs, outs_kt):
        assert bool(jnp.allclose(o1, o2, atol=5e-2, rtol=5e-2))

    # pure-JAX f32 reference (unfused, BN not folded) for correctness check.
    a_ref = build_normalized_adjacency(edge_index, num_nodes, dtype=jnp.float32)
    for name, o in zip(head_names, outs):
        p = head_params[name]
        hr = x
        for l in range(num_layers):
            lp = p["layers"][l]
            y = a_ref @ (hr @ lp["w"]) + lp["b"]
            y = (y - lp["mean"]) * jax.lax.rsqrt(lp["var"] + BN_EPS) * lp["gamma"] + lp["beta"]
            hr = jnp.maximum(y, 0.0)
        zr = a_ref @ (hr @ p["out"]["w"]) + p["out"]["b"]
        zr = jax.nn.log_softmax(zr, axis=1)

        assert o.shape == (num_nodes, out_channels[name])
        assert bool(jnp.all(jnp.isfinite(o)))
        assert bool(jnp.allclose(jnp.sum(jnp.exp(o), axis=1), 1.0, atol=1e-4))
        assert bool(jnp.allclose(o, zr, atol=1e-1, rtol=1e-1))   # bf16 MXU tolerance

    print("KERNEL_OK")
</pallas_src>

<mosaic_0001>
module attributes {stable_mosaic.version = 11 : i64} {
  func.func @kernel(%arg0: i32, %arg1: i32, %arg2: memref<256x256xbf16, #tpu.memory_space<vmem>>, %arg3: memref<256x128xbf16, #tpu.memory_space<vmem>>, %arg4: memref<128x128xbf16, #tpu.memory_space<vmem>>, %arg5: memref<1x128xf32, #tpu.memory_space<vmem>>, %arg6: memref<256x128xbf16, #tpu.memory_space<vmem>>, %arg7: memref<256x128xf32, #tpu.memory_space<vmem>>) attributes {dimension_semantics = [#tpu.dimension_semantics<parallel>, #tpu.dimension_semantics<arbitrary>], iteration_bounds = array<i64: 1, 1>, scalar_prefetch = 0 : i64, scratch_operands = 1 : i64, tpu.core_type = #tpu.core_type<tc>, window_params = [{transform_indices = @transform_0, window_bounds = array<i64: 256, 256>}, {pipeline_mode = #tpu.pipeline_mode<synchronous>, transform_indices = @transform_1, window_bounds = array<i64: 256, 128>}, {pipeline_mode = #tpu.pipeline_mode<synchronous>, transform_indices = @transform_2, window_bounds = array<i64: 128, 128>}, {pipeline_mode = #tpu.pipeline_mode<synchronous>, transform_indices = @transform_3, window_bounds = array<i64: 1, 128>}, {transform_indices = @transform_4, window_bounds = array<i64: 256, 128>}]} {
    %c0_i32 = arith.constant 0 : i32
    %0 = arith.cmpi eq, %arg1, %c0_i32 : i32
    %1 = arith.extui %0 : i1 to i32
    %c0_i32_0 = arith.constant 0 : i32
    %2 = arith.cmpi ne, %1, %c0_i32_0 : i32
    scf.if %2 {
      %cst_10 = arith.constant 0.000000e+00 : f32
      %12 = vector.broadcast %cst_10 : f32 to vector<256x128xf32>
      %c0_11 = arith.constant 0 : index
      %c0_12 = arith.constant 0 : index
      %13 = vector.load %arg7[%c0_11, %c0_12] : memref<256x128xf32, #tpu.memory_space<vmem>>, vector<256x128xf32>
      tpu.vector_store %arg7[%c0_11, %c0_12], %12 {strides = array<i32>} : memref<256x128xf32, #tpu.memory_space<vmem>>, vector<256x128xf32>,
    } else {
    }
    %c0 = arith.constant 0 : index
    %c0_1 = arith.constant 0 : index
    %3 = vector.load %arg7[%c0, %c0_1] : memref<256x128xf32, #tpu.memory_space<vmem>>, vector<256x128xf32>
    %c0_2 = arith.constant 0 : index
    %c0_3 = arith.constant 0 : index
    %4 = vector.load %arg2[%c0_2, %c0_3] : memref<256x256xbf16, #tpu.memory_space<vmem>>, vector<256x256xbf16>
    %c0_4 = arith.constant 0 : index
    %c0_5 = arith.constant 0 : index
    %5 = vector.load %arg3[%c0_4, %c0_5] : memref<256x128xbf16, #tpu.memory_space<vmem>>, vector<256x128xbf16>
    %cst = arith.constant dense<0.000000e+00> : vector<256x128xf32>
    %6 = tpu.matmul %4, %5, %cst {dimension_numbers = #tpu.dot_dimension_numbers<[1], [0], [0], [1], [0, 0, 1, 1], [], []>} : vector<256x256xbf16>, vector<256x128xbf16>, vector<256x128xf32> -> vector<256x128xf32>
    %7 = arith.addf %3, %6 : vector<256x128xf32>
    %c0_6 = arith.constant 0 : index
    %c0_7 = arith.constant 0 : index
    %8 = vector.load %arg7[%c0_6, %c0_7] : memref<256x128xf32, #tpu.memory_space<vmem>>, vector<256x128xf32>
    tpu.vector_store %arg7[%c0_6, %c0_7], %7 {strides = array<i32>} : memref<256x128xf32, #tpu.memory_space<vmem>>, vector<256x128xf32>,
    %c0_i32_8 = arith.constant 0 : i32
    %9 = arith.cmpi eq, %arg1, %c0_i32_8 : i32
    %10 = arith.extui %9 : i1 to i32
    %c0_i32_9 = arith.constant 0 : i32
    %11 = arith.cmpi ne, %10, %c0_i32_9 : i32
    scf.if %11 {
      %c0_10 = arith.constant 0 : index
      %c0_11 = arith.constant 0 : index
      %12 = vector.load %arg7[%c0_10, %c0_11] : memref<256x128xf32, #tpu.memory_space<vmem>>, vector<256x128xf32>
      %13 = arith.truncf %12 : vector<256x128xf32> to vector<256x128xbf16>
      %c0_12 = arith.constant 0 : index
      %c0_13 = arith.constant 0 : index
      %14 = vector.load %arg4[%c0_12, %c0_13] : memref<128x128xbf16, #tpu.memory_space<vmem>>, vector<128x128xbf16>
      %cst_14 = arith.constant dense<0.000000e+00> : vector<256x128xf32>
      %15 = tpu.matmul %13, %14, %cst_14 {dimension_numbers = #tpu.dot_dimension_numbers<[1], [0], [0], [1], [0, 0, 1, 1], [], []>} : vector<256x128xbf16>, vector<128x128xbf16>, vector<256x128xf32> -> vector<256x128xf32>
      %c0_15 = arith.constant 0 : index
      %c0_16 = arith.constant 0 : index
      %16 = vector.load %arg5[%c0_15, %c0_16] : memref<1x128xf32, #tpu.memory_space<vmem>>, vector<1x128xf32>
      %17 = vector.broadcast %16 : vector<1x128xf32> to vector<256x128xf32>
      %18 = arith.addf %15, %17 : vector<256x128xf32>
      %cst_17 = arith.constant 0.000000e+00 : f32
      %19 = vector.broadcast %cst_17 : f32 to vector<256x128xf32>
      %20 = arith.maximumf %18, %19 : vector<256x128xf32>
      %21 = arith.truncf %20 : vector<256x128xf32> to vector<256x128xbf16>
      %c0_18 = arith.constant 0 : index
      %c0_19 = arith.constant 0 : index
      %22 = vector.load %arg6[%c0_18, %c0_19] : memref<256x128xbf16, #tpu.memory_space<vmem>>, vector<256x128xbf16>
      tpu.vector_store %arg6[%c0_18, %c0_19], %21 {strides = array<i32>} : memref<256x128xbf16, #tpu.memory_space<vmem>>, vector<256x128xbf16>,
    } else {
    }
    return
  }
  func.func @transform_0(%arg0: i32, %arg1: i32) -> (i32, i32) {
    %c0_i32 = arith.constant 0 : i32
    return %arg0, %arg1 : i32, i32
  }
  func.func @transform_1(%arg0: i32, %arg1: i32) -> (i32, i32) {
    %c0_i32 = arith.constant 0 : i32
    %c0_i32_0 = arith.constant 0 : i32
    return %arg1, %c0_i32 : i32, i32
  }
  func.func @transform_2(%arg0: i32, %arg1: i32) -> (i32, i32) {
    %c0_i32 = arith.constant 0 : i32
    %c0_i32_0 = arith.constant 0 : i32
    %c0_i32_1 = arith.constant 0 : i32
    return %c0_i32, %c0_i32_0 : i32, i32
  }
  func.func @transform_3(%arg0: i32, %arg1: i32) -> (i32, i32) {
    %c0_i32 = arith.constant 0 : i32
    %c0_i32_0 = arith.constant 0 : i32
    %c0_i32_1 = arith.constant 0 : i32
    return %c0_i32, %c0_i32_0 : i32, i32
  }
  func.func @transform_4(%arg0: i32, %arg1: i32) -> (i32, i32) {
    %c0_i32 = arith.constant 0 : i32
    %c0_i32_0 = arith.constant 0 : i32
    return %arg0, %c0_i32 : i32, i32
  }
}

module attributes {stable_mosaic.version = 11 : i64} {
  func.func @kernel(%arg0: i32, %arg1: i32, %arg2: memref<256x256xbf16, #tpu.memory_space<vmem>>, %arg3: memref<256x128xbf16, #tpu.memory_space<vmem>>, %arg4: memref<128x128xbf16, #tpu.memory_space<vmem>>, %arg5: memref<1x128xf32, #tpu.memory_space<vmem>>, %arg6: memref<256x128xbf16, #tpu.memory_space<vmem>>, %arg7: memref<256x128xf32, #tpu.memory_space<vmem>>) attributes {dimension_semantics = [#tpu.dimension_semantics<parallel>, #tpu.dimension_semantics<arbitrary>], iteration_bounds = array<i64: 1, 1>, scalar_prefetch = 0 : i64, scratch_operands = 1 : i64, tpu.core_type = #tpu.core_type<tc>, window_params = [{transform_indices = @transform_0, window_bounds = array<i64: 256, 256>}, {transform_indices = @transform_1, window_bounds = array<i64: 256, 128>}, {pipeline_mode = #tpu.pipeline_mode<synchronous>, transform_indices = @transform_2, window_bounds = array<i64: 128, 128>}, {pipeline_mode = #tpu.pipeline_mode<synchronous>, transform_indices = @transform_3, window_bounds = array<i64: 1, 128>}, {transform_indices = @transform_4, window_bounds = array<i64: 256, 128>}]} {
    %c0_i32 = arith.constant 0 : i32
    %0 = arith.cmpi eq, %arg1, %c0_i32 : i32
    %1 = arith.extui %0 : i1 to i32
    %c0_i32_0 = arith.constant 0 : i32
    %2 = arith.cmpi ne, %1, %c0_i32_0 : i32
    scf.if %2 {
      %cst_10 = arith.constant 0.000000e+00 : f32
      %12 = vector.broadcast %cst_10 : f32 to vector<256x128xf32>
      %c0_11 = arith.constant 0 : index
      %c0_12 = arith.constant 0 : index
      %13 = vector.load %arg7[%c0_11, %c0_12] : memref<256x128xf32, #tpu.memory_space<vmem>>, vector<256x128xf32>
      tpu.vector_store %arg7[%c0_11, %c0_12], %12 {strides = array<i32>} : memref<256x128xf32, #tpu.memory_space<vmem>>, vector<256x128xf32>,
    } else {
    }
    %c0 = arith.constant 0 : index
    %c0_1 = arith.constant 0 : index
    %3 = vector.load %arg7[%c0, %c0_1] : memref<256x128xf32, #tpu.memory_space<vmem>>, vector<256x128xf32>
    %c0_2 = arith.constant 0 : index
    %c0_3 = arith.constant 0 : index
    %4 = vector.load %arg2[%c0_2, %c0_3] : memref<256x256xbf16, #tpu.memory_space<vmem>>, vector<256x256xbf16>
    %c0_4 = arith.constant 0 : index
    %c0_5 = arith.constant 0 : index
    %5 = vector.load %arg3[%c0_4, %c0_5] : memref<256x128xbf16, #tpu.memory_space<vmem>>, vector<256x128xbf16>
    %cst = arith.constant dense<0.000000e+00> : vector<256x128xf32>
    %6 = tpu.matmul %4, %5, %cst {dimension_numbers = #tpu.dot_dimension_numbers<[1], [0], [0], [1], [0, 0, 1, 1], [], []>} : vector<256x256xbf16>, vector<256x128xbf16>, vector<256x128xf32> -> vector<256x128xf32>
    %7 = arith.addf %3, %6 : vector<256x128xf32>
    %c0_6 = arith.constant 0 : index
    %c0_7 = arith.constant 0 : index
    %8 = vector.load %arg7[%c0_6, %c0_7] : memref<256x128xf32, #tpu.memory_space<vmem>>, vector<256x128xf32>
    tpu.vector_store %arg7[%c0_6, %c0_7], %7 {strides = array<i32>} : memref<256x128xf32, #tpu.memory_space<vmem>>, vector<256x128xf32>,
    %c0_i32_8 = arith.constant 0 : i32
    %9 = arith.cmpi eq, %arg1, %c0_i32_8 : i32
    %10 = arith.extui %9 : i1 to i32
    %c0_i32_9 = arith.constant 0 : i32
    %11 = arith.cmpi ne, %10, %c0_i32_9 : i32
    scf.if %11 {
      %c0_10 = arith.constant 0 : index
      %c0_11 = arith.constant 0 : index
      %12 = vector.load %arg7[%c0_10, %c0_11] : memref<256x128xf32, #tpu.memory_space<vmem>>, vector<256x128xf32>
      %13 = arith.truncf %12 : vector<256x128xf32> to vector<256x128xbf16>
      %c0_12 = arith.constant 0 : index
      %c0_13 = arith.constant 0 : index
      %14 = vector.load %arg4[%c0_12, %c0_13] : memref<128x128xbf16, #tpu.memory_space<vmem>>, vector<128x128xbf16>
      %cst_14 = arith.constant dense<0.000000e+00> : vector<256x128xf32>
      %15 = tpu.matmul %13, %14, %cst_14 {dimension_numbers = #tpu.dot_dimension_numbers<[1], [0], [0], [1], [0, 0, 1, 1], [], []>} : vector<256x128xbf16>, vector<128x128xbf16>, vector<256x128xf32> -> vector<256x128xf32>
      %c0_15 = arith.constant 0 : index
      %c0_16 = arith.constant 0 : index
      %16 = vector.load %arg5[%c0_15, %c0_16] : memref<1x128xf32, #tpu.memory_space<vmem>>, vector<1x128xf32>
      %17 = vector.broadcast %16 : vector<1x128xf32> to vector<256x128xf32>
      %18 = arith.addf %15, %17 : vector<256x128xf32>
      %cst_17 = arith.constant 0.000000e+00 : f32
      %19 = vector.broadcast %cst_17 : f32 to vector<256x128xf32>
      %20 = arith.maximumf %18, %19 : vector<256x128xf32>
      %21 = arith.truncf %20 : vector<256x128xf32> to vector<256x128xbf16>
      %c0_18 = arith.constant 0 : index
      %c0_19 = arith.constant 0 : index
      %22 = vector.load %arg6[%c0_18, %c0_19] : memref<256x128xbf16, #tpu.memory_space<vmem>>, vector<256x128xbf16>
      tpu.vector_store %arg6[%c0_18, %c0_19], %21 {strides = array<i32>} : memref<256x128xbf16, #tpu.memory_space<vmem>>, vector<256x128xbf16>,
    } else {
    }
    return
  }
  func.func @transform_0(%arg0: i32, %arg1: i32) -> (i32, i32) {
    %c0_i32 = arith.constant 0 : i32
    return %arg0, %arg1 : i32, i32
  }
  func.func @transform_1(%arg0: i32, %arg1: i32) -> (i32, i32) {
    %c0_i32 = arith.constant 0 : i32
    %c0_i32_0 = arith.constant 0 : i32
    return %arg1, %c0_i32 : i32, i32
  }
  func.func @transform_2(%arg0: i32, %arg1: i32) -> (i32, i32) {
    %c0_i32 = arith.constant 0 : i32
    %c0_i32_0 = arith.constant 0 : i32
    %c0_i32_1 = arith.constant 0 : i32
    return %c0_i32, %c0_i32_0 : i32, i32
  }
  func.func @transform_3(%arg0: i32, %arg1: i32) -> (i32, i32) {
    %c0_i32 = arith.constant 0 : i32
    %c0_i32_0 = arith.constant 0 : i32
    %c0_i32_1 = arith.constant 0 : i32
    return %c0_i32, %c0_i32_0 : i32, i32
  }
  func.func @transform_4(%arg0: i32, %arg1: i32) -> (i32, i32) {
    %c0_i32 = arith.constant 0 : i32
    %c0_i32_0 = arith.constant 0 : i32
    return %arg0, %c0_i32 : i32, i32
  }
}

</mosaic_0001>

<bundles_post_ra>
// kernel: tpu_custom_call.1
= control target key start
LH: loop header
LB: loop body
LE: loop exit
PB: predicated region body
PF: predicated region fallthrough
CT: control target
= control target key end

     0   :  { %9 = vsyncpa [#allocation4], 0  ;;  %s1629_s0 = inlined_call_operand.hbm [shape: bf16[256,256], index: 0, kind: input, shape index: {}]   ;;  %s1630_s1 = inlined_call_operand.hbm [shape: bf16[256,128], index: 1, kind: input, shape index: {}]   ;;  %s1631_s2 = inlined_call_operand.hbm [shape: bf16[128,128], index: 2, kind: input, shape index: {}]   ;;  %s1632_s3 = inlined_call_operand.vmem [shape: f32[1,128], index: 3, kind: input, shape index: {}]   ;;  %s1633_s4 = inlined_call_operand.hbm [shape: bf16[256,128], index: 4, kind: output, shape index: {}]  }
   0x1   :  { %10 = vsyncpa [#allocation7], 0  ;;  %s29_s17 = sshll.u32 %s1630_s1, 4  ;;  %s30_s17 = int_to_ptr.hbm [resolvable:$true] %s29_s17 }
   0x2   :  { %11 = vsyncpa [#allocation5], 0  ;;  %s1529_s18 = smov [#allocation6]   ;;  %s16_s22 = sshll.u32 %s1629_s0, 4  ;;  %s17_s22 = int_to_ptr.hbm [resolvable:$true] %s16_s22 }
   0x3   :  { %s31_s19 = sshll.u32 %s1529_s18, 4  ;;  %s1530_s23 = smov 64   ;;  %s32_s19 = int_to_ptr.vmem [resolvable:$true] %s31_s19 }
   0x4   :  { %s1531_s24 = smov 4   ;;  %s1532_s25 = smov [#allocation3]  }
   0x5   :  { %37 = dma.hbm_to_vmem [thread:$0]  %s30_s17, 2048, %s32_s19, [#allocation7], %s1530_s23, %s1530_s23, %s1531_s24  }
   0x6   :  { %s18_s26 = sshll.u32 %s1532_s25, 4  ;;  %s1533_s1 = smov 128   ;;  %s19_s26 = int_to_ptr.vmem [resolvable:$true] %s18_s26 }
   0x7   :  { %s1534_s27 = smov 8   ;;  %s42_s30 = sshll.u32 %s1631_s2, 4  ;;  %s43_s30 = int_to_ptr.hbm [resolvable:$true] %s42_s30 }
   0x8   :  { %24 = dma.hbm_to_vmem [thread:$0]  %s17_s22, 4096, %s19_s26, [#allocation4], %s1533_s1, %s1533_s1, %s1534_s27  }
   0x9   :  { %s1535_s5 = smov [#allocation8]  }
   0xa   :  { %s44_s0 = sshll.u32 %s1535_s5, 4  ;;  %s45_s0 = int_to_ptr.vmem [resolvable:$true] %s44_s0 }
   0xb   :  { %50 = dma.hbm_to_vmem [thread:$0]  %s43_s30, 1024, %s45_s0, [#allocation7], %s1530_s23, %s1530_s23, %s1531_s24  }
   0xc   :  { %1523 = dma.done.wait [#allocation4], 4096  }
   0xd   :  { %1524 = vsyncadd [#allocation4], 4294963200 }
   0xe   :  { %1525 = dma.done.wait [#allocation7], 3072  }
   0xf   :  { %1526 = vsyncadd [#allocation7], 4294964224  ;;  %v1282_v0 = vld [vmem:[#allocation6 + $0x38] sm:$0xff]  ;;  %v1281_v2 = vld [vmem:[#allocation6 + $0x30] sm:$0xff]  ;;  %s1005_s10 = sshll.u32 %s1633_s4, 4  ;;  %s1006_s10 = int_to_ptr.hbm [resolvable:$true] %s1005_s10 }
  0x10   :  { %v1290_v1 = vld [vmem:[#allocation6 + $0x78] sm:$0xff]  ;;  %453 = vmatpush.bf16.msra.mxu0 %v1282_v0  ;;  %1394 = vmatpush.bf16.msra.mxu3 %v1282_v0  ;;  %v1289_v3 = vld [vmem:[#allocation6 + $0x70] sm:$0xff]  ;;  %v1280_v4 = vld [vmem:[#allocation6 + $0x28] sm:$0xff] }
  0x11   :  { %542 = vmatpush.bf16.msra.mxu1 %v1290_v1  ;;  %v1288_v5 = vld [vmem:[#allocation6 + $0x68] sm:$0xff]  ;;  %v1279_v6 = vld [vmem:[#allocation6 + $0x20] sm:$0xff]  ;;  %v1278_v8 = vld [vmem:[#allocation6 + $0x18] sm:$0xff] }
  0x12   :  { %v1287_v7 = vld [vmem:[#allocation6 + $0x60] sm:$0xff]  ;;  %v1286_v9 = vld [vmem:[#allocation6 + $0x58] sm:$0xff]  ;;  %v1277_v10 = vld [vmem:[#allocation6 + $0x10] sm:$0xff] }
  0x13   :  { %v1285_v11 = vld [vmem:[#allocation6 + $0x50] sm:$0xff]  ;;  %v1276_v12 = vld [vmem:[#allocation6 + $0x8] sm:$0xff]  ;;  %v1275_v14 = vld [vmem:[#allocation6] sm:$0xff] }
  0x14   :  { %454 = vmatpush.bf16.msra.mxu0 %v1281_v2  ;;  %1395 = vmatpush.bf16.msra.mxu3 %v1281_v2  ;;  %v1284_v13 = vld [vmem:[#allocation6 + $0x48] sm:$0xff]  ;;  %v1021_v15 = vld [vmem:[#allocation3] sm:$0xf]  ;;  %v1243_v20 = vld [vmem:[#allocation3 + $0x4] sm:$0xf] }
  0x15   :  { %543 = vmatpush.bf16.msra.mxu1 %v1289_v3  ;;  %v1244_v16 = vld [vmem:[#allocation3 + $0x4] sm:$0xf0]  ;;  %v1117_v17 = vld [vmem:[#allocation3 + $0xc0] sm:$0xf]  ;;  %v1023_v21 = vld [vmem:[#allocation3 + $0x8] sm:$0xf0] }
  0x16   :  { %v1268_v18 = vld [vmem:[#allocation3 + $0xc4] sm:$0xf0]  ;;  %v1283_v19 = vld [vmem:[#allocation6 + $0x40] sm:$0xff]  ;;  %v1022_v22 = vor.u32 %v1244_v16, %v1021_v15  ;;  %v1026_v24 = vor.u32 %v1243_v20, %v1023_v21  ;;  %v1029_v25 = vld [vmem:[#allocation3 + $0x10] sm:$0xf] }
  0x17   :  { %v1118_v23 = vor.u32 %v1268_v18, %v1117_v17  ;;  %v1246_v26 = vld [vmem:[#allocation3 + $0x14] sm:$0xf0]  ;;  %v1125_v27 = vld [vmem:[#allocation3 + $0xd0] sm:$0xf]  ;;  %v1245_v29 = vld [vmem:[#allocation3 + $0x14] sm:$0xf] }
  0x18   :  { %455 = vmatpush.bf16.msra.mxu0 %v1280_v4  ;;  %1396 = vmatpush.bf16.msra.mxu3 %v1280_v4  ;;  %v1270_v28 = vld [vmem:[#allocation3 + $0xd4] sm:$0xf0]  ;;  %v1031_v30 = vld [vmem:[#allocation3 + $0x18] sm:$0xf0]  ;;  %v1030_v31 = vor.u32 %v1246_v26, %v1029_v25  ;;  %v1037_v34 = vld [vmem:[#allocation3 + $0x20] sm:$0xf] }
  0x19   :  { %544 = vmatpush.bf16.msra.mxu1 %v1288_v5  ;;  %v1126_v32 = vor.u32 %v1270_v28, %v1125_v27  ;;  %v1034_v33 = vor.u32 %v1245_v29, %v1031_v30  ;;  %v1248_v35 = vld [vmem:[#allocation3 + $0x24] sm:$0xf0]  ;;  %v1133_v36 = vld [vmem:[#allocation3 + $0xe0] sm:$0xf]  ;;  %v1247_v38 = vld [vmem:[#allocation3 + $0x24] sm:$0xf] }
  0x1a   :  { %v1272_v37 = vld [vmem:[#allocation3 + $0xe4] sm:$0xf0]  ;;  %v1039_v39 = vld [vmem:[#allocation3 + $0x28] sm:$0xf0]  ;;  %v1038_v40 = vor.u32 %v1248_v35, %v1037_v34  ;;  %v1045_v43 = vld [vmem:[#allocation3 + $0x30] sm:$0xf] }
  0x1b   :  { %v1134_v41 = vor.u32 %v1272_v37, %v1133_v36  ;;  %v1042_v42 = vor.u32 %v1247_v38, %v1039_v39  ;;  %v1250_v44 = vld [vmem:[#allocation3 + $0x34] sm:$0xf0]  ;;  %v1141_v45 = vld [vmem:[#allocation3 + $0xf0] sm:$0xf]  ;;  %v1249_v47 = vld [vmem:[#allocation3 + $0x34] sm:$0xf] }
  0x1c   :  { %456 = vmatpush.bf16.msra.mxu0 %v1279_v6  ;;  %1397 = vmatpush.bf16.msra.mxu3 %v1279_v6  ;;  %v1274_v46 = vld [vmem:[#allocation3 + $0xf4] sm:$0xf0]  ;;  %v1047_v48 = vld [vmem:[#allocation3 + $0x38] sm:$0xf0]  ;;  %v1046_v49 = vor.u32 %v1250_v44, %v1045_v43  ;;  %v1053_v52 = vld [vmem:[#allocation3 + $0x40] sm:$0xf] }
  0x1d   :  { %545 = vmatpush.bf16.msra.mxu1 %v1287_v7  ;;  %v1142_v50 = vor.u32 %v1274_v46, %v1141_v45  ;;  %v1050_v51 = vor.u32 %v1249_v47, %v1047_v48  ;;  %v1252_v53 = vld [vmem:[#allocation3 + $0x44] sm:$0xf0]  ;;  %v1267_v54 = vld [vmem:[#allocation3 + $0xc4] sm:$0xf]  ;;  %v1119_v55 = vld [vmem:[#allocation3 + $0xc8] sm:$0xf0] }
  0x1e   :  { %v1251_v56 = vld [vmem:[#allocation3 + $0x44] sm:$0xf]  ;;  %v1055_v57 = vld [vmem:[#allocation3 + $0x48] sm:$0xf0]  ;;  %v1054_v58 = vor.u32 %v1252_v53, %v1053_v52  ;;  %v1122_v59 = vor.u32 %v1267_v54, %v1119_v55  ;;  %v1298_v61 = vld [vmem:[#allocation8 + $0x38] sm:$0xff] }
  0x1f   :  { %v1058_v60 = vor.u32 %v1251_v56, %v1055_v57  ;;  %814 = vmatpush.bf16.msra.mxu2 %v1298_v61  ;;  %v1297_v62 = vld [vmem:[#allocation8 + $0x30] sm:$0xff]  ;;  %v1254_v0 = vld [vmem:[#allocation3 + $0x54] sm:$0xf0]  ;;  %v1127_v2 = vld [vmem:[#allocation3 + $0xd8] sm:$0xf0] }
  0x20   :  { %457 = vmatpush.bf16.msra.mxu0 %v1278_v8  ;;  %1398 = vmatpush.bf16.msra.mxu3 %v1278_v8  ;;  %v1061_v63 = vld [vmem:[#allocation3 + $0x50] sm:$0xf]  ;;  %v1063_v4 = vld [vmem:[#allocation3 + $0x58] sm:$0xf0]  ;;  %v1296_v8 = vld [vmem:[#allocation8 + $0x28] sm:$0xff] }
  0x21   :  { %546 = vmatpush.bf16.msra.mxu1 %v1286_v9  ;;  %v1255_v15 = vld [vmem:[#allocation3 + $0x64] sm:$0xf]  ;;  %v1071_v16 = vld [vmem:[#allocation3 + $0x68] sm:$0xf0]  ;;  %v1293_v20 = vld [vmem:[#allocation8 + $0x10] sm:$0xff] }
  0x22   :  { %v1292_v21 = vld [vmem:[#allocation8 + $0x8] sm:$0xff]  ;;  %v1273_v25 = vld [vmem:[#allocation3 + $0xf4] sm:$0xf]  ;;  %v1143_v26 = vld [vmem:[#allocation3 + $0xf8] sm:$0xf0] }
  0x23   :  { %815 = vmatpush.bf16.msra.mxu2 %v1297_v62  ;;  %v1257_v27 = vld [vmem:[#allocation3 + $0x74] sm:$0xf]  ;;  %v1079_v28 = vld [vmem:[#allocation3 + $0x78] sm:$0xf0]  ;;  %v1146_v30 = vor.u32 %v1273_v25, %v1143_v26  ;;  %v1259_v34 = vld [vmem:[#allocation3 + $0x84] sm:$0xf] }
  0x24   :  { %458 = vmatpush.bf16.msra.mxu0 %v1277_v10  ;;  %1399 = vmatpush.bf16.msra.mxu3 %v1277_v10  ;;  %v1294_v10 = vld [vmem:[#allocation8 + $0x18] sm:$0xff]  ;;  %v1087_v35 = vld [vmem:[#allocation3 + $0x88] sm:$0xf0]  ;;  %v1093_v46 = vld [vmem:[#allocation3 + $0x90] sm:$0xf] }
  0x25   :  { %547 = vmatpush.bf16.msra.mxu1 %v1285_v11  ;;  %v1090_v38 = vor.u32 %v1259_v34, %v1087_v35  ;;  %v1262_v47 = vld [vmem:[#allocation3 + $0x94] sm:$0xf0]  ;;  %v1261_v48 = vld [vmem:[#allocation3 + $0x94] sm:$0xf] }
  0x27   :  { %816 = vmatpush.bf16.msra.mxu2 %v1296_v8 }
  0x28   :  { %459 = vmatpush.bf16.msra.mxu0 %v1276_v12  ;;  %1400 = vmatpush.bf16.msra.mxu3 %v1276_v12  ;;  %v1256_v12 = vld [vmem:[#allocation3 + $0x64] sm:$0xf0] }
  0x29   :  { %548 = vmatpush.bf16.msra.mxu1 %v1284_v13 }
  0x2c   :  { %460 = vmatpush.bf16.msra.mxu0 %v1275_v14  ;;  %1401 = vmatpush.bf16.msra.mxu3 %v1275_v14  ;;  %v1135_v14 = vld [vmem:[#allocation3 + $0xe8] sm:$0xf0] }
  0x2d   :  { %549 = vmatpush.bf16.msra.mxu1 %v1283_v19 }
  0x2f   :  { %461 = vmatmul.bf16.vlgmr.msra.gmra.mxu0 %v1022_v22  ;;  %521 = vmatmul.bf16.vlgmr.msra.gmra.mxu3 %v1118_v23  ;;  %v1291_v22 = vld [vmem:[#allocation8] sm:$0xff]  ;;  %v1077_v23 = vld [vmem:[#allocation3 + $0x70] sm:$0xf] }
  0x30   :  { %1402 = vmatpush.bf16.msrb.mxu3 %v1290_v1  ;;  %550 = vmatmul.bf16.vlgmr.msra.gmra.mxu1 %v1026_v24  ;;  %v1269_v1 = vld [vmem:[#allocation3 + $0xd4] sm:$0xf]  ;;  %v1258_v24 = vld [vmem:[#allocation3 + $0x74] sm:$0xf0] }
  0x31   :  { %v1130_v6 = vor.u32 %v1269_v1, %v1127_v2  ;;  %v1078_v29 = vor.u32 %v1258_v24, %v1077_v23 }
  0x34   :  { %1403 = vmatpush.bf16.msrb.mxu3 %v1289_v3  ;;  %v1253_v3 = vld [vmem:[#allocation3 + $0x54] sm:$0xf] }
  0x38   :  { %1404 = vmatpush.bf16.msrb.mxu3 %v1288_v5  ;;  %v1062_v5 = vor.u32 %v1254_v0, %v1061_v63  ;;  %v1263_v63 = vld [vmem:[#allocation3 + $0xa4] sm:$0xf]  ;;  %v1103_v0 = vld [vmem:[#allocation3 + $0xa8] sm:$0xf0] }
  0x3c   :  { %1405 = vmatpush.bf16.msrb.mxu3 %v1287_v7  ;;  %v1066_v7 = vor.u32 %v1253_v3, %v1063_v4  ;;  %v1106_v4 = vor.u32 %v1263_v63, %v1103_v0 }
  0x3f   :  { %466 = vmatmul.bf16.gmra.mxu0 %v1030_v31  ;;  %526 = vmatmul.bf16.gmra.mxu3 %v1126_v32  ;;  %v1082_v31 = vor.u32 %v1257_v27, %v1079_v28  ;;  %v1085_v32 = vld [vmem:[#allocation3 + $0x80] sm:$0xf] }
  0x40   :  { %1406 = vmatpush.bf16.msrb.mxu3 %v1286_v9  ;;  %555 = vmatmul.bf16.gmra.mxu1 %v1034_v33  ;;  %v1295_v9 = vld [vmem:[#allocation8 + $0x20] sm:$0xff]  ;;  %v1260_v33 = vld [vmem:[#allocation3 + $0x84] sm:$0xf0] }
  0x41   :  { %817 = vmatpush.bf16.msra.mxu2 %v1295_v9  ;;  %v1086_v36 = vor.u32 %v1260_v33, %v1085_v32 }
  0x44   :  { %1407 = vmatpush.bf16.msrb.mxu3 %v1285_v11  ;;  %v1069_v11 = vld [vmem:[#allocation3 + $0x60] sm:$0xf] }
  0x45   :  { %818 = vmatpush.bf16.msra.mxu2 %v1294_v10  ;;  %v1070_v17 = vor.u32 %v1256_v12, %v1069_v11  ;;  %v1109_v12 = vld [vmem:[#allocation3 + $0xb0] sm:$0xf] }
  0x48   :  { %1408 = vmatpush.bf16.msrb.mxu3 %v1284_v13  ;;  %v1271_v13 = vld [vmem:[#allocation3 + $0xe4] sm:$0xf] }
  0x49   :  { %v1138_v18 = vor.u32 %v1271_v13, %v1135_v14  ;;  %819 = vmatpush.bf16.msra.mxu2 %v1293_v20  ;;  %v1266_v13 = vld [vmem:[#allocation3 + $0xb4] sm:$0xf0]  ;;  %v1265_v14 = vld [vmem:[#allocation3 + $0xb4] sm:$0xf] }
  0x4c   :  { %1409 = vmatpush.bf16.msrb.mxu3 %v1283_v19  ;;  %v1074_v19 = vor.u32 %v1255_v15, %v1071_v16  ;;  %v1111_v15 = vld [vmem:[#allocation3 + $0xb8] sm:$0xf0] }
  0x4d   :  { %820 = vmatpush.bf16.msra.mxu2 %v1292_v21 }
  0x4f   :  { %471 = vmatmul.bf16.gmra.mxu0 %v1038_v40  ;;  %531 = vmatmul.bf16.gmra.mxu3 %v1134_v41 }
  0x50   :  { %560 = vmatmul.bf16.gmra.mxu1 %v1042_v42  ;;  %1410 = vmatpush.bf16.msra.mxu3 %v1298_v61  ;;  %v1101_v61 = vld [vmem:[#allocation3 + $0xa0] sm:$0xf] }
  0x51   :  { %821 = vmatpush.bf16.msra.mxu2 %v1291_v22 }
  0x54   :  { %1411 = vmatpush.bf16.msra.mxu3 %v1297_v62  ;;  %v1264_v62 = vld [vmem:[#allocation3 + $0xa4] sm:$0xf0] }
  0x55   :  { %v1102_v2 = vor.u32 %v1264_v62, %v1101_v61 }
  0x58   :  { %1412 = vmatpush.bf16.msra.mxu3 %v1296_v8 }
  0x5c   :  { %1413 = vmatpush.bf16.msra.mxu3 %v1295_v9 }
  0x5f   :  { %476 = vmatmul.bf16.gmra.mxu0 %v1046_v49  ;;  %536 = vmatmul.bf16.gmra.mxu3 %v1142_v50  ;;  %v1095_v49 = vld [vmem:[#allocation3 + $0x98] sm:$0xf0] }
  0x60   :  { %565 = vmatmul.bf16.gmra.mxu1 %v1050_v51  ;;  %1414 = vmatpush.bf16.msra.mxu3 %v1294_v10  ;;  %v1094_v51 = vor.u32 %v1262_v47, %v1093_v46  ;;  %v1098_v53 = vor.u32 %v1261_v48, %v1095_v49 }
  0x64   :  { %1415 = vmatpush.bf16.msra.mxu3 %v1293_v20 }
  0x68   :  { %1416 = vmatpush.bf16.msra.mxu3 %v1292_v21 }
  0x6c   :  { %1417 = vmatpush.bf16.msra.mxu3 %v1291_v22 }
  0x6f   :  { %481 = vmatmul.bf16.gmra.mxu0 %v1054_v58  ;;  %610 = vmatmul.bf16.vlgmr.msrb.gmra.mxu3 %v1122_v59 }
  0x70   :  { %570 = vmatmul.bf16.gmra.mxu1 %v1058_v60 }
  0x7f   :  { %486 = vmatmul.bf16.gmra.mxu0 %v1062_v5  ;;  %615 = vmatmul.bf16.gmra.mxu3 %v1130_v6 }
  0x80   :  { %575 = vmatmul.bf16.gmra.mxu1 %v1066_v7 }
  0x8f   :  { %491 = vmatmul.bf16.gmra.mxu0 %v1070_v17  ;;  %620 = vmatmul.bf16.gmra.mxu3 %v1138_v18  ;;  %v1110_v17 = vor.u32 %v1266_v13, %v1109_v12 }
  0x90   :  { %580 = vmatmul.bf16.gmra.mxu1 %v1074_v19  ;;  %v1114_v19 = vor.u32 %v1265_v14, %v1111_v15 }
  0x9f   :  { %496 = vmatmul.bf16.gmra.mxu0 %v1078_v29  ;;  %625 = vmatmul.bf16.gmra.mxu3 %v1146_v30 }
  0xa0   :  { %585 = vmatmul.bf16.gmra.mxu1 %v1082_v31 }
  0xac   :  { %v462_v37 = vpop.f32.mrf.mxu0 }
  0xad   :  { %v551_v39 = vpop.f32.mrf.mxu1 }
  0xae   :  { %v552_v43 = vadd.f32 %v551_v39, %v462_v37 }
  0xaf   :  { %501 = vmatmul.bf16.gmra.mxu0 %v1086_v36 }
  0xb0   :  { %590 = vmatmul.bf16.gmra.mxu1 %v1090_v38 }
  0xb2   :  { %v1577_v40 = vpop.f32.mrf.mxu3 }
  0xb4   :  { %v464_v41 = vpop.f32.mrf.mxu0 }
  0xb5   :  { %v553_v42 = vpop.f32.mrf.mxu1 }
  0xb6   :  { %v554_v44 = vadd.f32 %v553_v42, %v464_v41 }
  0xb8   :  { %v730_v45 = vpack.c.bf16 %v554_v44, %v552_v43 }
  0xba   :  { %822 = vmatmul.bf16.vlgmr.msra.gmra.mxu2 %v730_v45  ;;  %v524_v50 = vpop.f32.mrf.mxu3 }
  0xbc   :  { %v467_v52 = vpop.f32.mrf.mxu0 }
  0xbd   :  { %v556_v54 = vpop.f32.mrf.mxu1 }
  0xbe   :  { %v557_v58 = vadd.f32 %v556_v54, %v467_v52 }
  0xbf   :  { %506 = vmatmul.bf16.gmra.mxu0 %v1094_v51 }
  0xc0   :  { %595 = vmatmul.bf16.gmra.mxu1 %v1098_v53 }
  0xc2   :  { %v1579_v55 = vpop.f32.mrf.mxu3 }
  0xc4   :  { %v469_v56 = vpop.f32.mrf.mxu0 }
  0xc5   :  { %v558_v57 = vpop.f32.mrf.mxu1 }
  0xc6   :  { %v559_v59 = vadd.f32 %v558_v57, %v469_v56 }
  0xc8   :  { %v731_v60 = vpack.c.bf16 %v559_v59, %v557_v58 }
  0xca   :  { %827 = vmatmul.bf16.gmra.mxu2 %v731_v60  ;;  %v529_v1 = vpop.f32.mrf.mxu3 }
  0xcc   :  { %v472_v3 = vpop.f32.mrf.mxu0 }
  0xcd   :  { %v561_v5 = vpop.f32.mrf.mxu1 }
  0xce   :  { %v562_v9 = vadd.f32 %v561_v5, %v472_v3 }
  0xcf   :  { %511 = vmatmul.bf16.gmra.mxu0 %v1102_v2 }
  0xd0   :  { %600 = vmatmul.bf16.gmra.mxu1 %v1106_v4 }
  0xd2   :  { %v1581_v6 = vpop.f32.mrf.mxu3 }
  0xd4   :  { %v474_v7 = vpop.f32.mrf.mxu0 }
  0xd5   :  { %v563_v8 = vpop.f32.mrf.mxu1 }
  0xd6   :  { %v564_v10 = vadd.f32 %v563_v8, %v474_v7 }
  0xd8   :  { %v732_v11 = vpack.c.bf16 %v564_v10, %v562_v9 }
  0xda   :  { %832 = vmatmul.bf16.gmra.mxu2 %v732_v11  ;;  %v534_v16 = vpop.f32.mrf.mxu3 }
  0xdc   :  { %v477_v18 = vpop.f32.mrf.mxu0 }
  0xdd   :  { %v566_v20 = vpop.f32.mrf.mxu1 }
  0xde   :  { %v567_v24 = vadd.f32 %v566_v20, %v477_v18 }
  0xdf   :  { %516 = vmatmul.bf16.gmra.mxu0 %v1110_v17 }
  0xe0   :  { %605 = vmatmul.bf16.gmra.mxu1 %v1114_v19 }
  0xe2   :  { %v537_v21 = vpop.f32.mrf.mxu3 }
  0xe4   :  { %v479_v22 = vpop.f32.mrf.mxu0 }
  0xe5   :  { %v568_v23 = vpop.f32.mrf.mxu1 }
  0xe6   :  { %v569_v25 = vadd.f32 %v568_v23, %v479_v22  ;;  %v1589_v23 = vld [vmem:[%s1632_s3] ss:$0 sm:$0xff]  ;;  %s1536_s3 = smov [#allocation9]  }
  0xe7   :  { %s1003_s7 = sshll.u32 %s1536_s3, 4  ;;  %s1004_s7 = int_to_ptr.vmem [resolvable:$true] %s1003_s7 }
  0xe8   :  { %v733_v26 = vpack.c.bf16 %v569_v25, %v567_v24 }
  0xea   :  { %837 = vmatmul.bf16.gmra.mxu2 %v733_v26  ;;  %v539_v27 = vpop.f32.mrf.mxu3 }
  0xec   :  { %v482_v28 = vpop.f32.mrf.mxu0 }
  0xed   :  { %v571_v29 = vpop.f32.mrf.mxu1 }
  0xee   :  { %v572_v33 = vadd.f32 %v571_v29, %v482_v28 }
  0xf2   :  { %v611_v30 = vpop.f32.mrf.mxu3 }
  0xf3   :  { %v612_v37 = vadd.f32 %v611_v30, %v1577_v40 }
  0xf4   :  { %v484_v31 = vpop.f32.mrf.mxu0 }
  0xf5   :  { %v573_v32 = vpop.f32.mrf.mxu1 }
  0xf6   :  { %v574_v34 = vadd.f32 %v573_v32, %v484_v31 }
  0xf8   :  { %v734_v35 = vpack.c.bf16 %v574_v34, %v572_v33 }
  0xfa   :  { %842 = vmatmul.bf16.gmra.mxu2 %v734_v35  ;;  %v613_v36 = vpop.f32.mrf.mxu3 }
  0xfb   :  { %v614_v38 = vadd.f32 %v613_v36, %v524_v50 }
  0xfc   :  { %v487_v39 = vpop.f32.mrf.mxu0 }
  0xfd   :  { %v742_v41 = vpack.c.bf16 %v614_v38, %v612_v37  ;;  %v576_v42 = vpop.f32.mrf.mxu1 }
  0xfe   :  { %v577_v46 = vadd.f32 %v576_v42, %v487_v39 }
  0xff   :  { %882 = vmatmul.bf16.vlgmr.msra.gmra.mxu3 %v742_v41 }
 0x102   :  { %v616_v43 = vpop.f32.mrf.mxu3 }
 0x103   :  { %v617_v51 = vadd.f32 %v616_v43, %v1579_v55 }
 0x104   :  { %v489_v44 = vpop.f32.mrf.mxu0 }
 0x105   :  { %v578_v45 = vpop.f32.mrf.mxu1 }
 0x106   :  { %v579_v47 = vadd.f32 %v578_v45, %v489_v44 }
 0x108   :  { %v735_v48 = vpack.c.bf16 %v579_v47, %v577_v46 }
 0x10a   :  { %847 = vmatmul.bf16.gmra.mxu2 %v735_v48  ;;  %v618_v49 = vpop.f32.mrf.mxu3 }
 0x10b   :  { %v619_v52 = vadd.f32 %v618_v49, %v529_v1 }
 0x10c   :  { %v492_v53 = vpop.f32.mrf.mxu0 }
 0x10d   :  { %v581_v54 = vpop.f32.mrf.mxu1  ;;  %v743_v56 = vpack.c.bf16 %v619_v52, %v617_v51 }
 0x10e   :  { %v582_v58 = vadd.f32 %v581_v54, %v492_v53 }
 0x10f   :  { %887 = vmatmul.bf16.gmra.mxu3 %v743_v56 }
 0x112   :  { %v621_v40 = vpop.f32.mrf.mxu3 }
 0x113   :  { %v622_v62 = vadd.f32 %v621_v40, %v1581_v6 }
 0x114   :  { %v494_v50 = vpop.f32.mrf.mxu0 }
 0x115   :  { %v583_v57 = vpop.f32.mrf.mxu1 }
 0x116   :  { %v584_v59 = vadd.f32 %v583_v57, %v494_v50 }
 0x118   :  { %v736_v60 = vpack.c.bf16 %v584_v59, %v582_v58 }
 0x11a   :  { %852 = vmatmul.bf16.gmra.mxu2 %v736_v60  ;;  %v623_v61 = vpop.f32.mrf.mxu3 }
 0x11b   :  { %v624_v63 = vadd.f32 %v623_v61, %v534_v16 }
 0x11c   :  { %v497_v0 = vpop.f32.mrf.mxu0 }
 0x11d   :  { %v586_v2 = vpop.f32.mrf.mxu1  ;;  %v744_v3 = vpack.c.bf16 %v624_v63, %v622_v62 }
 0x11e   :  { %v587_v5 = vadd.f32 %v586_v2, %v497_v0 }
 0x11f   :  { %892 = vmatmul.bf16.gmra.mxu3 %v744_v3 }
 0x122   :  { %v626_v55 = vpop.f32.mrf.mxu3 }
 0x123   :  { %v627_v10 = vadd.f32 %v626_v55, %v537_v21 }
 0x124   :  { %v499_v1 = vpop.f32.mrf.mxu0 }
 0x125   :  { %v588_v4 = vpop.f32.mrf.mxu1 }
 0x126   :  { %v589_v7 = vadd.f32 %v588_v4, %v499_v1 }
 0x128   :  { %v737_v8 = vpack.c.bf16 %v589_v7, %v587_v5 }
 0x12a   :  { %857 = vmatmul.bf16.gmra.mxu2 %v737_v8  ;;  %v628_v9 = vpop.f32.mrf.mxu3 }
 0x12b   :  { %v629_v11 = vadd.f32 %v628_v9, %v539_v27 }
 0x12c   :  { %v502_v12 = vpop.f32.mrf.mxu0 }
 0x12d   :  { %v591_v13 = vpop.f32.mrf.mxu1  ;;  %v745_v14 = vpack.c.bf16 %v629_v11, %v627_v10 }
 0x12e   :  { %v592_v16 = vadd.f32 %v591_v13, %v502_v12 }
 0x12f   :  { %897 = vmatmul.bf16.gmra.mxu3 %v745_v14 }
 0x134   :  { %v504_v6 = vpop.f32.mrf.mxu0 }
 0x135   :  { %v593_v15 = vpop.f32.mrf.mxu1 }
 0x136   :  { %v594_v17 = vadd.f32 %v593_v15, %v504_v6 }
 0x138   :  { %v738_v18 = vpack.c.bf16 %v594_v17, %v592_v16 }
 0x13a   :  { %862 = vmatmul.bf16.gmra.mxu2 %v738_v18 }
 0x13c   :  { %v507_v19 = vpop.f32.mrf.mxu0 }
 0x13d   :  { %v596_v20 = vpop.f32.mrf.mxu1  ;;  %v823_v22 = vpop.f32.mrf.mxu2 }
 0x13e   :  { %v824_v21 = vadd.f32 %v1589_v23, %v823_v22  ;;  %v597_v27 = vadd.f32 %v596_v20, %v507_v19 }
 0x140   :  { %v903_v30 = vmax.f32 %v824_v21, 0.0 }
 0x144   :  { %v509_v24 = vpop.f32.mrf.mxu0 }
 0x145   :  { %v598_v25 = vpop.f32.mrf.mxu1  ;;  %v825_v26 = vpop.f32.mrf.mxu2 }
 0x146   :  { %v599_v28 = vadd.f32 %v598_v25, %v509_v24  ;;  %v826_v29 = vadd.f32 %v1589_v23, %v825_v26 }
 0x148   :  { %v904_v31 = vmax.f32 %v826_v29, 0.0  ;;  %v739_v32 = vpack.c.bf16 %v599_v28, %v597_v27 }
 0x14a   :  { %v1302_v33 = vpack.c.bf16 %v904_v31, %v903_v30  ;;  %867 = vmatmul.bf16.gmra.mxu2 %v739_v32 }
 0x14c   :  { %1303 = vst [vmem:[#allocation9] sm:$0xff] %v1302_v33   ;;  %v512_v34 = vpop.f32.mrf.mxu0 }
 0x14d   :  { %v601_v35 = vpop.f32.mrf.mxu1  ;;  %v828_v36 = vpop.f32.mrf.mxu2 }
 0x14e   :  { %v829_v37 = vadd.f32 %v1589_v23, %v828_v36  ;;  %v602_v42 = vadd.f32 %v601_v35, %v512_v34 }
 0x150   :  { %v905_v45 = vmax.f32 %v829_v37, 0.0 }
 0x154   :  { %v514_v38 = vpop.f32.mrf.mxu0 }
 0x155   :  { %v603_v39 = vpop.f32.mrf.mxu1  ;;  %v830_v41 = vpop.f32.mrf.mxu2 }
 0x156   :  { %v604_v43 = vadd.f32 %v603_v39, %v514_v38  ;;  %v831_v44 = vadd.f32 %v1589_v23, %v830_v41 }
 0x158   :  { %v906_v46 = vmax.f32 %v831_v44, 0.0  ;;  %v740_v47 = vpack.c.bf16 %v604_v43, %v602_v42 }
 0x15a   :  { %v1307_v48 = vpack.c.bf16 %v906_v46, %v905_v45  ;;  %872 = vmatmul.bf16.gmra.mxu2 %v740_v47 }
 0x15c   :  { %1379 = vst [vmem:[#allocation9 + $0x8] sm:$0xff] %v1307_v48   ;;  %v517_v49 = vpop.f32.mrf.mxu0 }
 0x15d   :  { %v606_v51 = vpop.f32.mrf.mxu1  ;;  %v833_v52 = vpop.f32.mrf.mxu2 }
 0x15e   :  { %v834_v53 = vadd.f32 %v1589_v23, %v833_v52  ;;  %v607_v50 = vadd.f32 %v606_v51, %v517_v49 }
 0x160   :  { %v907_v59 = vmax.f32 %v834_v53, 0.0 }
 0x164   :  { %v519_v54 = vpop.f32.mrf.mxu0 }
 0x165   :  { %v608_v56 = vpop.f32.mrf.mxu1  ;;  %v835_v40 = vpop.f32.mrf.mxu2 }
 0x166   :  { %v609_v57 = vadd.f32 %v608_v56, %v519_v54  ;;  %v836_v58 = vadd.f32 %v1589_v23, %v835_v40 }
 0x168   :  { %v908_v60 = vmax.f32 %v836_v58, 0.0  ;;  %v741_v61 = vpack.c.bf16 %v609_v57, %v607_v50 }
 0x16a   :  { %v1312_v62 = vpack.c.bf16 %v908_v60, %v907_v59  ;;  %877 = vmatmul.bf16.gmra.mxu2 %v741_v61 }
 0x16c   :  { %1380 = vst [vmem:[#allocation9 + $0x10] sm:$0xff] %v1312_v62  }
 0x16d   :  { %v838_v63 = vpop.f32.mrf.mxu2 }
 0x16e   :  { %v839_v0 = vadd.f32 %v1589_v23, %v838_v63 }
 0x170   :  { %v909_v55 = vmax.f32 %v839_v0, 0.0 }
 0x175   :  { %v840_v2 = vpop.f32.mrf.mxu2 }
 0x176   :  { %v841_v3 = vadd.f32 %v1589_v23, %v840_v2 }
 0x178   :  { %v910_v1 = vmax.f32 %v841_v3, 0.0 }
 0x17a   :  { %v1317_v4 = vpack.c.bf16 %v910_v1, %v909_v55 }
 0x17c   :  { %1381 = vst [vmem:[#allocation9 + $0x18] sm:$0xff] %v1317_v4  }
 0x17d   :  { %v843_v5 = vpop.f32.mrf.mxu2 }
 0x17e   :  { %v844_v8 = vadd.f32 %v1589_v23, %v843_v5 }
 0x180   :  { %v911_v11 = vmax.f32 %v844_v8, 0.0 }
 0x182   :  { %v883_v7 = vpop.f32.mrf.mxu3 }
 0x183   :  { %v884_v13 = vadd.f32 %v1589_v23, %v883_v7 }
 0x185   :  { %v845_v9 = vpop.f32.mrf.mxu2  ;;  %v927_v16 = vmax.f32 %v884_v13, 0.0 }
 0x186   :  { %v846_v10 = vadd.f32 %v1589_v23, %v845_v9 }
 0x188   :  { %v912_v12 = vmax.f32 %v846_v10, 0.0 }
 0x18a   :  { %v1322_v14 = vpack.c.bf16 %v912_v12, %v911_v11  ;;  %v885_v6 = vpop.f32.mrf.mxu3 }
 0x18b   :  { %v886_v15 = vadd.f32 %v1589_v23, %v885_v6 }
 0x18c   :  { %1382 = vst [vmem:[#allocation9 + $0x20] sm:$0xff] %v1322_v14  }
 0x18d   :  { %v928_v17 = vmax.f32 %v886_v15, 0.0  ;;  %v848_v18 = vpop.f32.mrf.mxu2 }
 0x18e   :  { %v849_v22 = vadd.f32 %v1589_v23, %v848_v18 }
 0x18f   :  { %v1362_v19 = vpack.c.bf16 %v928_v17, %v927_v16 }
 0x190   :  { %v913_v25 = vmax.f32 %v849_v22, 0.0 }
 0x191   :  { %1390 = vst [vmem:[#allocation9 + $0x60] sm:$0xff] %v1362_v19  }
 0x192   :  { %v888_v20 = vpop.f32.mrf.mxu3 }
 0x193   :  { %v889_v27 = vadd.f32 %v1589_v23, %v888_v20 }
 0x195   :  { %v850_v21 = vpop.f32.mrf.mxu2  ;;  %v929_v31 = vmax.f32 %v889_v27, 0.0 }
 0x196   :  { %v851_v24 = vadd.f32 %v1589_v23, %v850_v21 }
 0x198   :  { %v914_v26 = vmax.f32 %v851_v24, 0.0 }
 0x19a   :  { %v1327_v28 = vpack.c.bf16 %v914_v26, %v913_v25  ;;  %v890_v29 = vpop.f32.mrf.mxu3 }
 0x19b   :  { %v891_v30 = vadd.f32 %v1589_v23, %v890_v29 }
 0x19c   :  { %1383 = vst [vmem:[#allocation9 + $0x28] sm:$0xff] %v1327_v28  }
 0x19d   :  { %v930_v32 = vmax.f32 %v891_v30, 0.0  ;;  %v853_v33 = vpop.f32.mrf.mxu2 }
 0x19e   :  { %v854_v36 = vadd.f32 %v1589_v23, %v853_v33 }
 0x19f   :  { %v1367_v34 = vpack.c.bf16 %v930_v32, %v929_v31 }
 0x1a0   :  { %v915_v39 = vmax.f32 %v854_v36, 0.0 }
 0x1a1   :  { %1391 = vst [vmem:[#allocation9 + $0x68] sm:$0xff] %v1367_v34  }
 0x1a2   :  { %v893_v35 = vpop.f32.mrf.mxu3 }
 0x1a3   :  { %v894_v42 = vadd.f32 %v1589_v23, %v893_v35 }
 0x1a5   :  { %v855_v37 = vpop.f32.mrf.mxu2  ;;  %v931_v46 = vmax.f32 %v894_v42, 0.0 }
 0x1a6   :  { %v856_v38 = vadd.f32 %v1589_v23, %v855_v37 }
 0x1a8   :  { %v916_v41 = vmax.f32 %v856_v38, 0.0 }
 0x1aa   :  { %v1332_v43 = vpack.c.bf16 %v916_v41, %v915_v39  ;;  %v895_v44 = vpop.f32.mrf.mxu3 }
 0x1ab   :  { %v896_v45 = vadd.f32 %v1589_v23, %v895_v44 }
 0x1ac   :  { %1384 = vst [vmem:[#allocation9 + $0x30] sm:$0xff] %v1332_v43  }
 0x1ad   :  { %v932_v47 = vmax.f32 %v896_v45, 0.0  ;;  %v858_v48 = vpop.f32.mrf.mxu2 }
 0x1ae   :  { %v859_v52 = vadd.f32 %v1589_v23, %v858_v48 }
 0x1af   :  { %v1372_v49 = vpack.c.bf16 %v932_v47, %v931_v46 }
 0x1b0   :  { %v917_v56 = vmax.f32 %v859_v52, 0.0 }
 0x1b1   :  { %1392 = vst [vmem:[#allocation9 + $0x70] sm:$0xff] %v1372_v49  }
 0x1b2   :  { %v898_v51 = vpop.f32.mrf.mxu3 }
 0x1b3   :  { %v899_v50 = vadd.f32 %v1589_v23, %v898_v51 }
 0x1b5   :  { %v860_v53 = vpop.f32.mrf.mxu2  ;;  %v933_v60 = vmax.f32 %v899_v50, 0.0 }
 0x1b6   :  { %v861_v54 = vadd.f32 %v1589_v23, %v860_v53 }
 0x1b8   :  { %v918_v40 = vmax.f32 %v861_v54, 0.0 }
 0x1ba   :  { %v1337_v57 = vpack.c.bf16 %v918_v40, %v917_v56  ;;  %v900_v58 = vpop.f32.mrf.mxu3 }
 0x1bb   :  { %v901_v59 = vadd.f32 %v1589_v23, %v900_v58 }
 0x1bc   :  { %1385 = vst [vmem:[#allocation9 + $0x38] sm:$0xff] %v1337_v57  }
 0x1bd   :  { %v934_v61 = vmax.f32 %v901_v59, 0.0  ;;  %v863_v62 = vpop.f32.mrf.mxu2 }
 0x1be   :  { %v864_v0 = vadd.f32 %v1589_v23, %v863_v62 }
 0x1bf   :  { %v1377_v63 = vpack.c.bf16 %v934_v61, %v933_v60 }
 0x1c0   :  { %v919_v55 = vmax.f32 %v864_v0, 0.0 }
 0x1c1   :  { %1393 = vst [vmem:[#allocation9 + $0x78] sm:$0xff] %v1377_v63  }
 0x1c5   :  { %v865_v2 = vpop.f32.mrf.mxu2 }
 0x1c6   :  { %v866_v3 = vadd.f32 %v1589_v23, %v865_v2 }
 0x1c8   :  { %v920_v1 = vmax.f32 %v866_v3, 0.0 }
 0x1ca   :  { %v1342_v4 = vpack.c.bf16 %v920_v1, %v919_v55 }
 0x1cc   :  { %1386 = vst [vmem:[#allocation9 + $0x40] sm:$0xff] %v1342_v4  }
 0x1cd   :  { %v868_v5 = vpop.f32.mrf.mxu2 }
 0x1ce   :  { %v869_v7 = vadd.f32 %v1589_v23, %v868_v5 }
 0x1d0   :  { %v921_v10 = vmax.f32 %v869_v7, 0.0 }
 0x1d5   :  { %v870_v8 = vpop.f32.mrf.mxu2 }
 0x1d6   :  { %v871_v9 = vadd.f32 %v1589_v23, %v870_v8 }
 0x1d8   :  { %v922_v11 = vmax.f32 %v871_v9, 0.0 }
 0x1da   :  { %v1347_v12 = vpack.c.bf16 %v922_v11, %v921_v10 }
 0x1dc   :  { %1387 = vst [vmem:[#allocation9 + $0x48] sm:$0xff] %v1347_v12  }
 0x1dd   :  { %v873_v13 = vpop.f32.mrf.mxu2 }
 0x1de   :  { %v874_v14 = vadd.f32 %v1589_v23, %v873_v13 }
 0x1e0   :  { %v923_v16 = vmax.f32 %v874_v14, 0.0 }
 0x1e5   :  { %v875_v6 = vpop.f32.mrf.mxu2 }
 0x1e6   :  { %v876_v15 = vadd.f32 %v1589_v23, %v875_v6 }
 0x1e8   :  { %v924_v17 = vmax.f32 %v876_v15, 0.0 }
 0x1ea   :  { %v1352_v18 = vpack.c.bf16 %v924_v17, %v923_v16 }
 0x1ec   :  { %1388 = vst [vmem:[#allocation9 + $0x50] sm:$0xff] %v1352_v18  }
 0x1ed   :  { %v878_v19 = vpop.f32.mrf.mxu2 }
 0x1ee   :  { %v879_v20 = vadd.f32 %v1589_v23, %v878_v19 }
 0x1f0   :  { %v925_v24 = vmax.f32 %v879_v20, 0.0 }
 0x1f5   :  { %v880_v22 = vpop.f32.mrf.mxu2 }
 0x1f6   :  { %v881_v21 = vadd.f32 %v1589_v23, %v880_v22 }
 0x1f8   :  { %v926_v25 = vmax.f32 %v881_v21, 0.0 }
 0x1fa   :  { %v1357_v26 = vpack.c.bf16 %v926_v25, %v925_v24 }
 0x1fc   :  { %1389 = vst [vmem:[#allocation9 + $0x58] sm:$0xff] %v1357_v26  }
 0x1fd   :  { %1011 = dma.vmem_to_hbm [thread:$0]  %s1004_s7, 2048, %s1006_s10, [#allocation5], %s1530_s23, %s1530_s23, %s1531_s24  }
 0x1fe   :  { %1527 = dma.done.wait [#allocation5], 2048  }
 0x1ff   :  { %1528 = vsyncadd [#allocation5], 4294965248 }
 0x200   :  { %1016 = vsyncpa [#allocation4], 1 }
 0x201   :  { %1017 = vsyncpa [#allocation7], 1 }
 0x202   :  { %1018 = vsyncpa [#allocation5], 1 }

// kernel: tpu_custom_call.1
= control target key start
LH: loop header
LB: loop body
LE: loop exit
PB: predicated region body
PF: predicated region fallthrough
CT: control target
= control target key end

     0   :  { %9 = vsyncpa [#allocation4], 0  ;;  %s1629_s0 = inlined_call_operand.hbm [shape: bf16[256,256], index: 0, kind: input, shape index: {}]   ;;  %s1630_s1 = inlined_call_operand.hbm [shape: bf16[256,128], index: 1, kind: input, shape index: {}]   ;;  %s1631_s2 = inlined_call_operand.hbm [shape: bf16[128,128], index: 2, kind: input, shape index: {}]   ;;  %s1632_s3 = inlined_call_operand.vmem [shape: f32[1,128], index: 3, kind: input, shape index: {}]   ;;  %s1633_s4 = inlined_call_operand.hbm [shape: bf16[256,128], index: 4, kind: output, shape index: {}]  }
   0x1   :  { %10 = vsyncpa [#allocation7], 0  ;;  %s29_s17 = sshll.u32 %s1630_s1, 4  ;;  %s30_s17 = int_to_ptr.hbm [resolvable:$true] %s29_s17 }
   0x2   :  { %11 = vsyncpa [#allocation5], 0  ;;  %s1529_s18 = smov [#allocation6]   ;;  %s16_s22 = sshll.u32 %s1629_s0, 4  ;;  %s17_s22 = int_to_ptr.hbm [resolvable:$true] %s16_s22 }
   0x3   :  { %s31_s19 = sshll.u32 %s1529_s18, 4  ;;  %s1530_s23 = smov 64   ;;  %s32_s19 = int_to_ptr.vmem [resolvable:$true] %s31_s19 }
   0x4   :  { %s1531_s24 = smov 4   ;;  %s1532_s25 = smov [#allocation3]  }
   0x5   :  { %37 = dma.hbm_to_vmem [thread:$0]  %s30_s17, 2048, %s32_s19, [#allocation7], %s1530_s23, %s1530_s23, %s1531_s24  }
   0x6   :  { %s18_s26 = sshll.u32 %s1532_s25, 4  ;;  %s1533_s1 = smov 128   ;;  %s19_s26 = int_to_ptr.vmem [resolvable:$true] %s18_s26 }
   0x7   :  { %s1534_s27 = smov 8   ;;  %s42_s30 = sshll.u32 %s1631_s2, 4  ;;  %s43_s30 = int_to_ptr.hbm [resolvable:$true] %s42_s30 }
   0x8   :  { %24 = dma.hbm_to_vmem [thread:$0]  %s17_s22, 4096, %s19_s26, [#allocation4], %s1533_s1, %s1533_s1, %s1534_s27  }
   0x9   :  { %s1535_s5 = smov [#allocation8]  }
   0xa   :  { %s44_s0 = sshll.u32 %s1535_s5, 4  ;;  %s45_s0 = int_to_ptr.vmem [resolvable:$true] %s44_s0 }
   0xb   :  { %50 = dma.hbm_to_vmem [thread:$0]  %s43_s30, 1024, %s45_s0, [#allocation7], %s1530_s23, %s1530_s23, %s1531_s24  }
   0xc   :  { %1523 = dma.done.wait [#allocation4], 4096  }
   0xd   :  { %1524 = vsyncadd [#allocation4], 4294963200 }
   0xe   :  { %1525 = dma.done.wait [#allocation7], 3072  }
   0xf   :  { %1526 = vsyncadd [#allocation7], 4294964224  ;;  %v1282_v0 = vld [vmem:[#allocation6 + $0x38] sm:$0xff]  ;;  %v1281_v2 = vld [vmem:[#allocation6 + $0x30] sm:$0xff]  ;;  %s1005_s10 = sshll.u32 %s1633_s4, 4  ;;  %s1006_s10 = int_to_ptr.hbm [resolvable:$true] %s1005_s10 }
  0x10   :  { %v1290_v1 = vld [vmem:[#allocation6 + $0x78] sm:$0xff]  ;;  %453 = vmatpush.bf16.msra.mxu0 %v1282_v0  ;;  %1394 = vmatpush.bf16.msra.mxu3 %v1282_v0  ;;  %v1289_v3 = vld [vmem:[#allocation6 + $0x70] sm:$0xff]  ;;  %v1280_v4 = vld [vmem:[#allocation6 + $0x28] sm:$0xff] }
  0x11   :  { %542 = vmatpush.bf16.msra.mxu1 %v1290_v1  ;;  %v1288_v5 = vld [vmem:[#allocation6 + $0x68] sm:$0xff]  ;;  %v1279_v6 = vld [vmem:[#allocation6 + $0x20] sm:$0xff]  ;;  %v1278_v8 = vld [vmem:[#allocation6 + $0x18] sm:$0xff] }
  0x12   :  { %v1287_v7 = vld [vmem:[#allocation6 + $0x60] sm:$0xff]  ;;  %v1286_v9 = vld [vmem:[#allocation6 + $0x58] sm:$0xff]  ;;  %v1277_v10 = vld [vmem:[#allocation6 + $0x10] sm:$0xff] }
  0x13   :  { %v1285_v11 = vld [vmem:[#allocation6 + $0x50] sm:$0xff]  ;;  %v1276_v12 = vld [vmem:[#allocation6 + $0x8] sm:$0xff]  ;;  %v1275_v14 = vld [vmem:[#allocation6] sm:$0xff] }
  0x14   :  { %454 = vmatpush.bf16.msra.mxu0 %v1281_v2  ;;  %1395 = vmatpush.bf16.msra.mxu3 %v1281_v2  ;;  %v1284_v13 = vld [vmem:[#allocation6 + $0x48] sm:$0xff]  ;;  %v1021_v15 = vld [vmem:[#allocation3] sm:$0xf]  ;;  %v1243_v20 = vld [vmem:[#allocation3 + $0x4] sm:$0xf] }
  0x15   :  { %543 = vmatpush.bf16.msra.mxu1 %v1289_v3  ;;  %v1244_v16 = vld [vmem:[#allocation3 + $0x4] sm:$0xf0]  ;;  %v1117_v17 = vld [vmem:[#allocation3 + $0xc0] sm:$0xf]  ;;  %v1023_v21 = vld [vmem:[#allocation3 + $0x8] sm:$0xf0] }
  0x16   :  { %v1268_v18 = vld [vmem:[#allocation3 + $0xc4] sm:$0xf0]  ;;  %v1283_v19 = vld [vmem:[#allocation6 + $0x40] sm:$0xff]  ;;  %v1022_v22 = vor.u32 %v1244_v16, %v1021_v15  ;;  %v1026_v24 = vor.u32 %v1243_v20, %v1023_v21  ;;  %v1029_v25 = vld [vmem:[#allocation3 + $0x10] sm:$0xf] }
  0x17   :  { %v1118_v23 = vor.u32 %v1268_v18, %v1117_v17  ;;  %v1246_v26 = vld [vmem:[#allocation3 + $0x14] sm:$0xf0]  ;;  %v1125_v27 = vld [vmem:[#allocation3 + $0xd0] sm:$0xf]  ;;  %v1245_v29 = vld [vmem:[#allocation3 + $0x14] sm:$0xf] }
  0x18   :  { %455 = vmatpush.bf16.msra.mxu0 %v1280_v4  ;;  %1396 = vmatpush.bf16.msra.mxu3 %v1280_v4  ;;  %v1270_v28 = vld [vmem:[#allocation3 + $0xd4] sm:$0xf0]  ;;  %v1031_v30 = vld [vmem:[#allocation3 + $0x18] sm:$0xf0]  ;;  %v1030_v31 = vor.u32 %v1246_v26, %v1029_v25  ;;  %v1037_v34 = vld [vmem:[#allocation3 + $0x20] sm:$0xf] }
  0x19   :  { %544 = vmatpush.bf16.msra.mxu1 %v1288_v5  ;;  %v1126_v32 = vor.u32 %v1270_v28, %v1125_v27  ;;  %v1034_v33 = vor.u32 %v1245_v29, %v1031_v30  ;;  %v1248_v35 = vld [vmem:[#allocation3 + $0x24] sm:$0xf0]  ;;  %v1133_v36 = vld [vmem:[#allocation3 + $0xe0] sm:$0xf]  ;;  %v1247_v38 = vld [vmem:[#allocation3 + $0x24] sm:$0xf] }
  0x1a   :  { %v1272_v37 = vld [vmem:[#allocation3 + $0xe4] sm:$0xf0]  ;;  %v1039_v39 = vld [vmem:[#allocation3 + $0x28] sm:$0xf0]  ;;  %v1038_v40 = vor.u32 %v1248_v35, %v1037_v34  ;;  %v1045_v43 = vld [vmem:[#allocation3 + $0x30] sm:$0xf] }
  0x1b   :  { %v1134_v41 = vor.u32 %v1272_v37, %v1133_v36  ;;  %v1042_v42 = vor.u32 %v1247_v38, %v1039_v39  ;;  %v1250_v44 = vld [vmem:[#allocation3 + $0x34] sm:$0xf0]  ;;  %v1141_v45 = vld [vmem:[#allocation3 + $0xf0] sm:$0xf]  ;;  %v1249_v47 = vld [vmem:[#allocation3 + $0x34] sm:$0xf] }
  0x1c   :  { %456 = vmatpush.bf16.msra.mxu0 %v1279_v6  ;;  %1397 = vmatpush.bf16.msra.mxu3 %v1279_v6  ;;  %v1274_v46 = vld [vmem:[#allocation3 + $0xf4] sm:$0xf0]  ;;  %v1047_v48 = vld [vmem:[#allocation3 + $0x38] sm:$0xf0]  ;;  %v1046_v49 = vor.u32 %v1250_v44, %v1045_v43  ;;  %v1053_v52 = vld [vmem:[#allocation3 + $0x40] sm:$0xf] }
  0x1d   :  { %545 = vmatpush.bf16.msra.mxu1 %v1287_v7  ;;  %v1142_v50 = vor.u32 %v1274_v46, %v1141_v45  ;;  %v1050_v51 = vor.u32 %v1249_v47, %v1047_v48  ;;  %v1252_v53 = vld [vmem:[#allocation3 + $0x44] sm:$0xf0]  ;;  %v1267_v54 = vld [vmem:[#allocation3 + $0xc4] sm:$0xf]  ;;  %v1119_v55 = vld [vmem:[#allocation3 + $0xc8] sm:$0xf0] }
  0x1e   :  { %v1251_v56 = vld [vmem:[#allocation3 + $0x44] sm:$0xf]  ;;  %v1055_v57 = vld [vmem:[#allocation3 + $0x48] sm:$0xf0]  ;;  %v1054_v58 = vor.u32 %v1252_v53, %v1053_v52  ;;  %v1122_v59 = vor.u32 %v1267_v54, %v1119_v55  ;;  %v1298_v61 = vld [vmem:[#allocation8 + $0x38] sm:$0xff] }
  0x1f   :  { %v1058_v60 = vor.u32 %v1251_v56, %v1055_v57  ;;  %814 = vmatpush.bf16.msra.mxu2 %v1298_v61  ;;  %v1297_v62 = vld [vmem:[#allocation8 + $0x30] sm:$0xff]  ;;  %v1254_v0 = vld [vmem:[#allocation3 + $0x54] sm:$0xf0]  ;;  %v1127_v2 = vld [vmem:[#allocation3 + $0xd8] sm:$0xf0] }
  0x20   :  { %457 = vmatpush.bf16.msra.mxu0 %v1278_v8  ;;  %1398 = vmatpush.bf16.msra.mxu3 %v1278_v8  ;;  %v1061_v63 = vld [vmem:[#allocation3 + $0x50] sm:$0xf]  ;;  %v1063_v4 = vld [vmem:[#allocation3 + $0x58] sm:$0xf0]  ;;  %v1296_v8 = vld [vmem:[#allocation8 + $0x28] sm:$0xff] }
  0x21   :  { %546 = vmatpush.bf16.msra.mxu1 %v1286_v9  ;;  %v1255_v15 = vld [vmem:[#allocation3 + $0x64] sm:$0xf]  ;;  %v1071_v16 = vld [vmem:[#allocation3 + $0x68] sm:$0xf0]  ;;  %v1293_v20 = vld [vmem:[#allocation8 + $0x10] sm:$0xff] }
  0x22   :  { %v1292_v21 = vld [vmem:[#allocation8 + $0x8] sm:$0xff]  ;;  %v1273_v25 = vld [vmem:[#allocation3 + $0xf4] sm:$0xf]  ;;  %v1143_v26 = vld [vmem:[#allocation3 + $0xf8] sm:$0xf0] }
  0x23   :  { %815 = vmatpush.bf16.msra.mxu2 %v1297_v62  ;;  %v1257_v27 = vld [vmem:[#allocation3 + $0x74] sm:$0xf]  ;;  %v1079_v28 = vld [vmem:[#allocation3 + $0x78] sm:$0xf0]  ;;  %v1146_v30 = vor.u32 %v1273_v25, %v1143_v26  ;;  %v1259_v34 = vld [vmem:[#allocation3 + $0x84] sm:$0xf] }
  0x24   :  { %458 = vmatpush.bf16.msra.mxu0 %v1277_v10  ;;  %1399 = vmatpush.bf16.msra.mxu3 %v1277_v10  ;;  %v1294_v10 = vld [vmem:[#allocation8 + $0x18] sm:$0xff]  ;;  %v1087_v35 = vld [vmem:[#allocation3 + $0x88] sm:$0xf0]  ;;  %v1093_v46 = vld [vmem:[#allocation3 + $0x90] sm:$0xf] }
  0x25   :  { %547 = vmatpush.bf16.msra.mxu1 %v1285_v11  ;;  %v1090_v38 = vor.u32 %v1259_v34, %v1087_v35  ;;  %v1262_v47 = vld [vmem:[#allocation3 + $0x94] sm:$0xf0]  ;;  %v1261_v48 = vld [vmem:[#allocation3 + $0x94] sm:$0xf] }
  0x27   :  { %816 = vmatpush.bf16.msra.mxu2 %v1296_v8 }
  0x28   :  { %459 = vmatpush.bf16.msra.mxu0 %v1276_v12  ;;  %1400 = vmatpush.bf16.msra.mxu3 %v1276_v12  ;;  %v1256_v12 = vld [vmem:[#allocation3 + $0x64] sm:$0xf0] }
  0x29   :  { %548 = vmatpush.bf16.msra.mxu1 %v1284_v13 }
  0x2c   :  { %460 = vmatpush.bf16.msra.mxu0 %v1275_v14  ;;  %1401 = vmatpush.bf16.msra.mxu3 %v1275_v14  ;;  %v1135_v14 = vld [vmem:[#allocation3 + $0xe8] sm:$0xf0] }
  0x2d   :  { %549 = vmatpush.bf16.msra.mxu1 %v1283_v19 }
  0x2f   :  { %461 = vmatmul.bf16.vlgmr.msra.gmra.mxu0 %v1022_v22  ;;  %521 = vmatmul.bf16.vlgmr.msra.gmra.mxu3 %v1118_v23  ;;  %v1291_v22 = vld [vmem:[#allocation8] sm:$0xff]  ;;  %v1077_v23 = vld [vmem:[#allocation3 + $0x70] sm:$0xf] }
  0x30   :  { %1402 = vmatpush.bf16.msrb.mxu3 %v1290_v1  ;;  %550 = vmatmul.bf16.vlgmr.msra.gmra.mxu1 %v1026_v24  ;;  %v1269_v1 = vld [vmem:[#allocation3 + $0xd4] sm:$0xf]  ;;  %v1258_v24 = vld [vmem:[#allocation3 + $0x74] sm:$0xf0] }
  0x31   :  { %v1130_v6 = vor.u32 %v1269_v1, %v1127_v2  ;;  %v1078_v29 = vor.u32 %v1258_v24, %v1077_v23 }
  0x34   :  { %1403 = vmatpush.bf16.msrb.mxu3 %v1289_v3  ;;  %v1253_v3 = vld [vmem:[#allocation3 + $0x54] sm:$0xf] }
  0x38   :  { %1404 = vmatpush.bf16.msrb.mxu3 %v1288_v5  ;;  %v1062_v5 = vor.u32 %v1254_v0, %v1061_v63  ;;  %v1263_v63 = vld [vmem:[#allocation3 + $0xa4] sm:$0xf]  ;;  %v1103_v0 = vld [vmem:[#allocation3 + $0xa8] sm:$0xf0] }
  0x3c   :  { %1405 = vmatpush.bf16.msrb.mxu3 %v1287_v7  ;;  %v1066_v7 = vor.u32 %v1253_v3, %v1063_v4  ;;  %v1106_v4 = vor.u32 %v1263_v63, %v1103_v0 }
  0x3f   :  { %466 = vmatmul.bf16.gmra.mxu0 %v1030_v31  ;;  %526 = vmatmul.bf16.gmra.mxu3 %v1126_v32  ;;  %v1082_v31 = vor.u32 %v1257_v27, %v1079_v28  ;;  %v1085_v32 = vld [vmem:[#allocation3 + $0x80] sm:$0xf] }
  0x40   :  { %1406 = vmatpush.bf16.msrb.mxu3 %v1286_v9  ;;  %555 = vmatmul.bf16.gmra.mxu1 %v1034_v33  ;;  %v1295_v9 = vld [vmem:[#allocation8 + $0x20] sm:$0xff]  ;;  %v1260_v33 = vld [vmem:[#allocation3 + $0x84] sm:$0xf0] }
  0x41   :  { %817 = vmatpush.bf16.msra.mxu2 %v1295_v9  ;;  %v1086_v36 = vor.u32 %v1260_v33, %v1085_v32 }
  0x44   :  { %1407 = vmatpush.bf16.msrb.mxu3 %v1285_v11  ;;  %v1069_v11 = vld [vmem:[#allocation3 + $0x60] sm:$0xf] }
  0x45   :  { %818 = vmatpush.bf16.msra.mxu2 %v1294_v10  ;;  %v1070_v17 = vor.u32 %v1256_v12, %v1069_v11  ;;  %v1109_v12 = vld [vmem:[#allocation3 + $0xb0] sm:$0xf] }
  0x48   :  { %1408 = vmatpush.bf16.msrb.mxu3 %v1284_v13  ;;  %v1271_v13 = vld [vmem:[#allocation3 + $0xe4] sm:$0xf] }
  0x49   :  { %v1138_v18 = vor.u32 %v1271_v13, %v1135_v14  ;;  %819 = vmatpush.bf16.msra.mxu2 %v1293_v20  ;;  %v1266_v13 = vld [vmem:[#allocation3 + $0xb4] sm:$0xf0]  ;;  %v1265_v14 = vld [vmem:[#allocation3 + $0xb4] sm:$0xf] }
  0x4c   :  { %1409 = vmatpush.bf16.msrb.mxu3 %v1283_v19  ;;  %v1074_v19 = vor.u32 %v1255_v15, %v1071_v16  ;;  %v1111_v15 = vld [vmem:[#allocation3 + $0xb8] sm:$0xf0] }
  0x4d   :  { %820 = vmatpush.bf16.msra.mxu2 %v1292_v21 }
  0x4f   :  { %471 = vmatmul.bf16.gmra.mxu0 %v1038_v40  ;;  %531 = vmatmul.bf16.gmra.mxu3 %v1134_v41 }
  0x50   :  { %560 = vmatmul.bf16.gmra.mxu1 %v1042_v42  ;;  %1410 = vmatpush.bf16.msra.mxu3 %v1298_v61  ;;  %v1101_v61 = vld [vmem:[#allocation3 + $0xa0] sm:$0xf] }
  0x51   :  { %821 = vmatpush.bf16.msra.mxu2 %v1291_v22 }
  0x54   :  { %1411 = vmatpush.bf16.msra.mxu3 %v1297_v62  ;;  %v1264_v62 = vld [vmem:[#allocation3 + $0xa4] sm:$0xf0] }
  0x55   :  { %v1102_v2 = vor.u32 %v1264_v62, %v1101_v61 }
  0x58   :  { %1412 = vmatpush.bf16.msra.mxu3 %v1296_v8 }
  0x5c   :  { %1413 = vmatpush.bf16.msra.mxu3 %v1295_v9 }
  0x5f   :  { %476 = vmatmul.bf16.gmra.mxu0 %v1046_v49  ;;  %536 = vmatmul.bf16.gmra.mxu3 %v1142_v50  ;;  %v1095_v49 = vld [vmem:[#allocation3 + $0x98] sm:$0xf0] }
  0x60   :  { %565 = vmatmul.bf16.gmra.mxu1 %v1050_v51  ;;  %1414 = vmatpush.bf16.msra.mxu3 %v1294_v10  ;;  %v1094_v51 = vor.u32 %v1262_v47, %v1093_v46  ;;  %v1098_v53 = vor.u32 %v1261_v48, %v1095_v49 }
  0x64   :  { %1415 = vmatpush.bf16.msra.mxu3 %v1293_v20 }
  0x68   :  { %1416 = vmatpush.bf16.msra.mxu3 %v1292_v21 }
  0x6c   :  { %1417 = vmatpush.bf16.msra.mxu3 %v1291_v22 }
  0x6f   :  { %481 = vmatmul.bf16.gmra.mxu0 %v1054_v58  ;;  %610 = vmatmul.bf16.vlgmr.msrb.gmra.mxu3 %v1122_v59 }
  0x70   :  { %570 = vmatmul.bf16.gmra.mxu1 %v1058_v60 }
  0x7f   :  { %486 = vmatmul.bf16.gmra.mxu0 %v1062_v5  ;;  %615 = vmatmul.bf16.gmra.mxu3 %v1130_v6 }
  0x80   :  { %575 = vmatmul.bf16.gmra.mxu1 %v1066_v7 }
  0x8f   :  { %491 = vmatmul.bf16.gmra.mxu0 %v1070_v17  ;;  %620 = vmatmul.bf16.gmra.mxu3 %v1138_v18  ;;  %v1110_v17 = vor.u32 %v1266_v13, %v1109_v12 }
  0x90   :  { %580 = vmatmul.bf16.gmra.mxu1 %v1074_v19  ;;  %v1114_v19 = vor.u32 %v1265_v14, %v1111_v15 }
  0x9f   :  { %496 = vmatmul.bf16.gmra.mxu0 %v1078_v29  ;;  %625 = vmatmul.bf16.gmra.mxu3 %v1146_v30 }
  0xa0   :  { %585 = vmatmul.bf16.gmra.mxu1 %v1082_v31 }
  0xac   :  { %v462_v37 = vpop.f32.mrf.mxu0 }
  0xad   :  { %v551_v39 = vpop.f32.mrf.mxu1 }
  0xae   :  { %v552_v43 = vadd.f32 %v551_v39, %v462_v37 }
  0xaf   :  { %501 = vmatmul.bf16.gmra.mxu0 %v1086_v36 }
  0xb0   :  { %590 = vmatmul.bf16.gmra.mxu1 %v1090_v38 }
  0xb2   :  { %v1577_v40 = vpop.f32.mrf.mxu3 }
  0xb4   :  { %v464_v41 = vpop.f32.mrf.mxu0 }
  0xb5   :  { %v553_v42 = vpop.f32.mrf.mxu1 }
  0xb6   :  { %v554_v44 = vadd.f32 %v553_v42, %v464_v41 }
  0xb8   :  { %v730_v45 = vpack.c.bf16 %v554_v44, %v552_v43 }
  0xba   :  { %822 = vmatmul.bf16.vlgmr.msra.gmra.mxu2 %v730_v45  ;;  %v524_v50 = vpop.f32.mrf.mxu3 }
  0xbc   :  { %v467_v52 = vpop.f32.mrf.mxu0 }
  0xbd   :  { %v556_v54 = vpop.f32.mrf.mxu1 }
  0xbe   :  { %v557_v58 = vadd.f32 %v556_v54, %v467_v52 }
  0xbf   :  { %506 = vmatmul.bf16.gmra.mxu0 %v1094_v51 }
  0xc0   :  { %595 = vmatmul.bf16.gmra.mxu1 %v1098_v53 }
  0xc2   :  { %v1579_v55 = vpop.f32.mrf.mxu3 }
  0xc4   :  { %v469_v56 = vpop.f32.mrf.mxu0 }
  0xc5   :  { %v558_v57 = vpop.f32.mrf.mxu1 }
  0xc6   :  { %v559_v59 = vadd.f32 %v558_v57, %v469_v56 }
  0xc8   :  { %v731_v60 = vpack.c.bf16 %v559_v59, %v557_v58 }
  0xca   :  { %827 = vmatmul.bf16.gmra.mxu2 %v731_v60  ;;  %v529_v1 = vpop.f32.mrf.mxu3 }
  0xcc   :  { %v472_v3 = vpop.f32.mrf.mxu0 }
  0xcd   :  { %v561_v5 = vpop.f32.mrf.mxu1 }
  0xce   :  { %v562_v9 = vadd.f32 %v561_v5, %v472_v3 }
  0xcf   :  { %511 = vmatmul.bf16.gmra.mxu0 %v1102_v2 }
  0xd0   :  { %600 = vmatmul.bf16.gmra.mxu1 %v1106_v4 }
  0xd2   :  { %v1581_v6 = vpop.f32.mrf.mxu3 }
  0xd4   :  { %v474_v7 = vpop.f32.mrf.mxu0 }
  0xd5   :  { %v563_v8 = vpop.f32.mrf.mxu1 }
  0xd6   :  { %v564_v10 = vadd.f32 %v563_v8, %v474_v7 }
  0xd8   :  { %v732_v11 = vpack.c.bf16 %v564_v10, %v562_v9 }
  0xda   :  { %832 = vmatmul.bf16.gmra.mxu2 %v732_v11  ;;  %v534_v16 = vpop.f32.mrf.mxu3 }
  0xdc   :  { %v477_v18 = vpop.f32.mrf.mxu0 }
  0xdd   :  { %v566_v20 = vpop.f32.mrf.mxu1 }
  0xde   :  { %v567_v24 = vadd.f32 %v566_v20, %v477_v18 }
  0xdf   :  { %516 = vmatmul.bf16.gmra.mxu0 %v1110_v17 }
  0xe0   :  { %605 = vmatmul.bf16.gmra.mxu1 %v1114_v19 }
  0xe2   :  { %v537_v21 = vpop.f32.mrf.mxu3 }
  0xe4   :  { %v479_v22 = vpop.f32.mrf.mxu0 }
  0xe5   :  { %v568_v23 = vpop.f32.mrf.mxu1 }
  0xe6   :  { %v569_v25 = vadd.f32 %v568_v23, %v479_v22  ;;  %v1589_v23 = vld [vmem:[%s1632_s3] ss:$0 sm:$0xff]  ;;  %s1536_s3 = smov [#allocation9]  }
  0xe7   :  { %s1003_s7 = sshll.u32 %s1536_s3, 4  ;;  %s1004_s7 = int_to_ptr.vmem [resolvable:$true] %s1003_s7 }
  0xe8   :  { %v733_v26 = vpack.c.bf16 %v569_v25, %v567_v24 }
  0xea   :  { %837 = vmatmul.bf16.gmra.mxu2 %v733_v26  ;;  %v539_v27 = vpop.f32.mrf.mxu3 }
  0xec   :  { %v482_v28 = vpop.f32.mrf.mxu0 }
  0xed   :  { %v571_v29 = vpop.f32.mrf.mxu1 }
  0xee   :  { %v572_v33 = vadd.f32 %v571_v29, %v482_v28 }
  0xf2   :  { %v611_v30 = vpop.f32.mrf.mxu3 }
  0xf3   :  { %v612_v37 = vadd.f32 %v611_v30, %v1577_v40 }
  0xf4   :  { %v484_v31 = vpop.f32.mrf.mxu0 }
  0xf5   :  { %v573_v32 = vpop.f32.mrf.mxu1 }
  0xf6   :  { %v574_v34 = vadd.f32 %v573_v32, %v484_v31 }
  0xf8   :  { %v734_v35 = vpack.c.bf16 %v574_v34, %v572_v33 }
  0xfa   :  { %842 = vmatmul.bf16.gmra.mxu2 %v734_v35  ;;  %v613_v36 = vpop.f32.mrf.mxu3 }
  0xfb   :  { %v614_v38 = vadd.f32 %v613_v36, %v524_v50 }
  0xfc   :  { %v487_v39 = vpop.f32.mrf.mxu0 }
  0xfd   :  { %v742_v41 = vpack.c.bf16 %v614_v38, %v612_v37  ;;  %v576_v42 = vpop.f32.mrf.mxu1 }
  0xfe   :  { %v577_v46 = vadd.f32 %v576_v42, %v487_v39 }
  0xff   :  { %882 = vmatmul.bf16.vlgmr.msra.gmra.mxu3 %v742_v41 }
 0x102   :  { %v616_v43 = vpop.f32.mrf.mxu3 }
 0x103   :  { %v617_v51 = vadd.f32 %v616_v43, %v1579_v55 }
 0x104   :  { %v489_v44 = vpop.f32.mrf.mxu0 }
 0x105   :  { %v578_v45 = vpop.f32.mrf.mxu1 }
 0x106   :  { %v579_v47 = vadd.f32 %v578_v45, %v489_v44 }
 0x108   :  { %v735_v48 = vpack.c.bf16 %v579_v47, %v577_v46 }
 0x10a   :  { %847 = vmatmul.bf16.gmra.mxu2 %v735_v48  ;;  %v618_v49 = vpop.f32.mrf.mxu3 }
 0x10b   :  { %v619_v52 = vadd.f32 %v618_v49, %v529_v1 }
 0x10c   :  { %v492_v53 = vpop.f32.mrf.mxu0 }
 0x10d   :  { %v581_v54 = vpop.f32.mrf.mxu1  ;;  %v743_v56 = vpack.c.bf16 %v619_v52, %v617_v51 }
 0x10e   :  { %v582_v58 = vadd.f32 %v581_v54, %v492_v53 }
 0x10f   :  { %887 = vmatmul.bf16.gmra.mxu3 %v743_v56 }
 0x112   :  { %v621_v40 = vpop.f32.mrf.mxu3 }
 0x113   :  { %v622_v62 = vadd.f32 %v621_v40, %v1581_v6 }
 0x114   :  { %v494_v50 = vpop.f32.mrf.mxu0 }
 0x115   :  { %v583_v57 = vpop.f32.mrf.mxu1 }
 0x116   :  { %v584_v59 = vadd.f32 %v583_v57, %v494_v50 }
 0x118   :  { %v736_v60 = vpack.c.bf16 %v584_v59, %v582_v58 }
 0x11a   :  { %852 = vmatmul.bf16.gmra.mxu2 %v736_v60  ;;  %v623_v61 = vpop.f32.mrf.mxu3 }
 0x11b   :  { %v624_v63 = vadd.f32 %v623_v61, %v534_v16 }
 0x11c   :  { %v497_v0 = vpop.f32.mrf.mxu0 }
 0x11d   :  { %v586_v2 = vpop.f32.mrf.mxu1  ;;  %v744_v3 = vpack.c.bf16 %v624_v63, %v622_v62 }
 0x11e   :  { %v587_v5 = vadd.f32 %v586_v2, %v497_v0 }
 0x11f   :  { %892 = vmatmul.bf16.gmra.mxu3 %v744_v3 }
 0x122   :  { %v626_v55 = vpop.f32.mrf.mxu3 }
 0x123   :  { %v627_v10 = vadd.f32 %v626_v55, %v537_v21 }
 0x124   :  { %v499_v1 = vpop.f32.mrf.mxu0 }
 0x125   :  { %v588_v4 = vpop.f32.mrf.mxu1 }
 0x126   :  { %v589_v7 = vadd.f32 %v588_v4, %v499_v1 }
 0x128   :  { %v737_v8 = vpack.c.bf16 %v589_v7, %v587_v5 }
 0x12a   :  { %857 = vmatmul.bf16.gmra.mxu2 %v737_v8  ;;  %v628_v9 = vpop.f32.mrf.mxu3 }
 0x12b   :  { %v629_v11 = vadd.f32 %v628_v9, %v539_v27 }
 0x12c   :  { %v502_v12 = vpop.f32.mrf.mxu0 }
 0x12d   :  { %v591_v13 = vpop.f32.mrf.mxu1  ;;  %v745_v14 = vpack.c.bf16 %v629_v11, %v627_v10 }
 0x12e   :  { %v592_v16 = vadd.f32 %v591_v13, %v502_v12 }
 0x12f   :  { %897 = vmatmul.bf16.gmra.mxu3 %v745_v14 }
 0x134   :  { %v504_v6 = vpop.f32.mrf.mxu0 }
 0x135   :  { %v593_v15 = vpop.f32.mrf.mxu1 }
 0x136   :  { %v594_v17 = vadd.f32 %v593_v15, %v504_v6 }
 0x138   :  { %v738_v18 = vpack.c.bf16 %v594_v17, %v592_v16 }
 0x13a   :  { %862 = vmatmul.bf16.gmra.mxu2 %v738_v18 }
 0x13c   :  { %v507_v19 = vpop.f32.mrf.mxu0 }
 0x13d   :  { %v596_v20 = vpop.f32.mrf.mxu1  ;;  %v823_v22 = vpop.f32.mrf.mxu2 }
 0x13e   :  { %v824_v21 = vadd.f32 %v1589_v23, %v823_v22  ;;  %v597_v27 = vadd.f32 %v596_v20, %v507_v19 }
 0x140   :  { %v903_v30 = vmax.f32 %v824_v21, 0.0 }
 0x144   :  { %v509_v24 = vpop.f32.mrf.mxu0 }
 0x145   :  { %v598_v25 = vpop.f32.mrf.mxu1  ;;  %v825_v26 = vpop.f32.mrf.mxu2 }
 0x146   :  { %v599_v28 = vadd.f32 %v598_v25, %v509_v24  ;;  %v826_v29 = vadd.f32 %v1589_v23, %v825_v26 }
 0x148   :  { %v904_v31 = vmax.f32 %v826_v29, 0.0  ;;  %v739_v32 = vpack.c.bf16 %v599_v28, %v597_v27 }
 0x14a   :  { %v1302_v33 = vpack.c.bf16 %v904_v31, %v903_v30  ;;  %867 = vmatmul.bf16.gmra.mxu2 %v739_v32 }
 0x14c   :  { %1303 = vst [vmem:[#allocation9] sm:$0xff] %v1302_v33   ;;  %v512_v34 = vpop.f32.mrf.mxu0 }
 0x14d   :  { %v601_v35 = vpop.f32.mrf.mxu1  ;;  %v828_v36 = vpop.f32.mrf.mxu2 }
 0x14e   :  { %v829_v37 = vadd.f32 %v1589_v23, %v828_v36  ;;  %v602_v42 = vadd.f32 %v601_v35, %v512_v34 }
 0x150   :  { %v905_v45 = vmax.f32 %v829_v37, 0.0 }
 0x154   :  { %v514_v38 = vpop.f32.mrf.mxu0 }
 0x155   :  { %v603_v39 = vpop.f32.mrf.mxu1  ;;  %v830_v41 = vpop.f32.mrf.mxu2 }
 0x156   :  { %v604_v43 = vadd.f32 %v603_v39, %v514_v38  ;;  %v831_v44 = vadd.f32 %v1589_v23, %v830_v41 }
 0x158   :  { %v906_v46 = vmax.f32 %v831_v44, 0.0  ;;  %v740_v47 = vpack.c.bf16 %v604_v43, %v602_v42 }
 0x15a   :  { %v1307_v48 = vpack.c.bf16 %v906_v46, %v905_v45  ;;  %872 = vmatmul.bf16.gmra.mxu2 %v740_v47 }
 0x15c   :  { %1379 = vst [vmem:[#allocation9 + $0x8] sm:$0xff] %v1307_v48   ;;  %v517_v49 = vpop.f32.mrf.mxu0 }
 0x15d   :  { %v606_v51 = vpop.f32.mrf.mxu1  ;;  %v833_v52 = vpop.f32.mrf.mxu2 }
 0x15e   :  { %v834_v53 = vadd.f32 %v1589_v23, %v833_v52  ;;  %v607_v50 = vadd.f32 %v606_v51, %v517_v49 }
 0x160   :  { %v907_v59 = vmax.f32 %v834_v53, 0.0 }
 0x164   :  { %v519_v54 = vpop.f32.mrf.mxu0 }
 0x165   :  { %v608_v56 = vpop.f32.mrf.mxu1  ;;  %v835_v40 = vpop.f32.mrf.mxu2 }
 0x166   :  { %v609_v57 = vadd.f32 %v608_v56, %v519_v54  ;;  %v836_v58 = vadd.f32 %v1589_v23, %v835_v40 }
 0x168   :  { %v908_v60 = vmax.f32 %v836_v58, 0.0  ;;  %v741_v61 = vpack.c.bf16 %v609_v57, %v607_v50 }
 0x16a   :  { %v1312_v62 = vpack.c.bf16 %v908_v60, %v907_v59  ;;  %877 = vmatmul.bf16.gmra.mxu2 %v741_v61 }
 0x16c   :  { %1380 = vst [vmem:[#allocation9 + $0x10] sm:$0xff] %v1312_v62  }
 0x16d   :  { %v838_v63 = vpop.f32.mrf.mxu2 }
 0x16e   :  { %v839_v0 = vadd.f32 %v1589_v23, %v838_v63 }
 0x170   :  { %v909_v55 = vmax.f32 %v839_v0, 0.0 }
 0x175   :  { %v840_v2 = vpop.f32.mrf.mxu2 }
 0x176   :  { %v841_v3 = vadd.f32 %v1589_v23, %v840_v2 }
 0x178   :  { %v910_v1 = vmax.f32 %v841_v3, 0.0 }
 0x17a   :  { %v1317_v4 = vpack.c.bf16 %v910_v1, %v909_v55 }
 0x17c   :  { %1381 = vst [vmem:[#allocation9 + $0x18] sm:$0xff] %v1317_v4  }
 0x17d   :  { %v843_v5 = vpop.f32.mrf.mxu2 }
 0x17e   :  { %v844_v8 = vadd.f32 %v1589_v23, %v843_v5 }
 0x180   :  { %v911_v11 = vmax.f32 %v844_v8, 0.0 }
 0x182   :  { %v883_v7 = vpop.f32.mrf.mxu3 }
 0x183   :  { %v884_v13 = vadd.f32 %v1589_v23, %v883_v7 }
 0x185   :  { %v845_v9 = vpop.f32.mrf.mxu2  ;;  %v927_v16 = vmax.f32 %v884_v13, 0.0 }
 0x186   :  { %v846_v10 = vadd.f32 %v1589_v23, %v845_v9 }
 0x188   :  { %v912_v12 = vmax.f32 %v846_v10, 0.0 }
 0x18a   :  { %v1322_v14 = vpack.c.bf16 %v912_v12, %v911_v11  ;;  %v885_v6 = vpop.f32.mrf.mxu3 }
 0x18b   :  { %v886_v15 = vadd.f32 %v1589_v23, %v885_v6 }
 0x18c   :  { %1382 = vst [vmem:[#allocation9 + $0x20] sm:$0xff] %v1322_v14  }
 0x18d   :  { %v928_v17 = vmax.f32 %v886_v15, 0.0  ;;  %v848_v18 = vpop.f32.mrf.mxu2 }
 0x18e   :  { %v849_v22 = vadd.f32 %v1589_v23, %v848_v18 }
 0x18f   :  { %v1362_v19 = vpack.c.bf16 %v928_v17, %v927_v16 }
 0x190   :  { %v913_v25 = vmax.f32 %v849_v22, 0.0 }
 0x191   :  { %1390 = vst [vmem:[#allocation9 + $0x60] sm:$0xff] %v1362_v19  }
 0x192   :  { %v888_v20 = vpop.f32.mrf.mxu3 }
 0x193   :  { %v889_v27 = vadd.f32 %v1589_v23, %v888_v20 }
 0x195   :  { %v850_v21 = vpop.f32.mrf.mxu2  ;;  %v929_v31 = vmax.f32 %v889_v27, 0.0 }
 0x196   :  { %v851_v24 = vadd.f32 %v1589_v23, %v850_v21 }
 0x198   :  { %v914_v26 = vmax.f32 %v851_v24, 0.0 }
 0x19a   :  { %v1327_v28 = vpack.c.bf16 %v914_v26, %v913_v25  ;;  %v890_v29 = vpop.f32.mrf.mxu3 }
 0x19b   :  { %v891_v30 = vadd.f32 %v1589_v23, %v890_v29 }
 0x19c   :  { %1383 = vst [vmem:[#allocation9 + $0x28] sm:$0xff] %v1327_v28  }
 0x19d   :  { %v930_v32 = vmax.f32 %v891_v30, 0.0  ;;  %v853_v33 = vpop.f32.mrf.mxu2 }
 0x19e   :  { %v854_v36 = vadd.f32 %v1589_v23, %v853_v33 }
 0x19f   :  { %v1367_v34 = vpack.c.bf16 %v930_v32, %v929_v31 }
 0x1a0   :  { %v915_v39 = vmax.f32 %v854_v36, 0.0 }
 0x1a1   :  { %1391 = vst [vmem:[#allocation9 + $0x68] sm:$0xff] %v1367_v34  }
 0x1a2   :  { %v893_v35 = vpop.f32.mrf.mxu3 }
 0x1a3   :  { %v894_v42 = vadd.f32 %v1589_v23, %v893_v35 }
 0x1a5   :  { %v855_v37 = vpop.f32.mrf.mxu2  ;;  %v931_v46 = vmax.f32 %v894_v42, 0.0 }
 0x1a6   :  { %v856_v38 = vadd.f32 %v1589_v23, %v855_v37 }
 0x1a8   :  { %v916_v41 = vmax.f32 %v856_v38, 0.0 }
 0x1aa   :  { %v1332_v43 = vpack.c.bf16 %v916_v41, %v915_v39  ;;  %v895_v44 = vpop.f32.mrf.mxu3 }
 0x1ab   :  { %v896_v45 = vadd.f32 %v1589_v23, %v895_v44 }
 0x1ac   :  { %1384 = vst [vmem:[#allocation9 + $0x30] sm:$0xff] %v1332_v43  }
 0x1ad   :  { %v932_v47 = vmax.f32 %v896_v45, 0.0  ;;  %v858_v48 = vpop.f32.mrf.mxu2 }
 0x1ae   :  { %v859_v52 = vadd.f32 %v1589_v23, %v858_v48 }
 0x1af   :  { %v1372_v49 = vpack.c.bf16 %v932_v47, %v931_v46 }
 0x1b0   :  { %v917_v56 = vmax.f32 %v859_v52, 0.0 }
 0x1b1   :  { %1392 = vst [vmem:[#allocation9 + $0x70] sm:$0xff] %v1372_v49  }
 0x1b2   :  { %v898_v51 = vpop.f32.mrf.mxu3 }
 0x1b3   :  { %v899_v50 = vadd.f32 %v1589_v23, %v898_v51 }
 0x1b5   :  { %v860_v53 = vpop.f32.mrf.mxu2  ;;  %v933_v60 = vmax.f32 %v899_v50, 0.0 }
 0x1b6   :  { %v861_v54 = vadd.f32 %v1589_v23, %v860_v53 }
 0x1b8   :  { %v918_v40 = vmax.f32 %v861_v54, 0.0 }
 0x1ba   :  { %v1337_v57 = vpack.c.bf16 %v918_v40, %v917_v56  ;;  %v900_v58 = vpop.f32.mrf.mxu3 }
 0x1bb   :  { %v901_v59 = vadd.f32 %v1589_v23, %v900_v58 }
 0x1bc   :  { %1385 = vst [vmem:[#allocation9 + $0x38] sm:$0xff] %v1337_v57  }
 0x1bd   :  { %v934_v61 = vmax.f32 %v901_v59, 0.0  ;;  %v863_v62 = vpop.f32.mrf.mxu2 }
 0x1be   :  { %v864_v0 = vadd.f32 %v1589_v23, %v863_v62 }
 0x1bf   :  { %v1377_v63 = vpack.c.bf16 %v934_v61, %v933_v60 }
 0x1c0   :  { %v919_v55 = vmax.f32 %v864_v0, 0.0 }
 0x1c1   :  { %1393 = vst [vmem:[#allocation9 + $0x78] sm:$0xff] %v1377_v63  }
 0x1c5   :  { %v865_v2 = vpop.f32.mrf.mxu2 }
 0x1c6   :  { %v866_v3 = vadd.f32 %v1589_v23, %v865_v2 }
 0x1c8   :  { %v920_v1 = vmax.f32 %v866_v3, 0.0 }
 0x1ca   :  { %v1342_v4 = vpack.c.bf16 %v920_v1, %v919_v55 }
 0x1cc   :  { %1386 = vst [vmem:[#allocation9 + $0x40] sm:$0xff] %v1342_v4  }
 0x1cd   :  { %v868_v5 = vpop.f32.mrf.mxu2 }
 0x1ce   :  { %v869_v7 = vadd.f32 %v1589_v23, %v868_v5 }
 0x1d0   :  { %v921_v10 = vmax.f32 %v869_v7, 0.0 }
 0x1d5   :  { %v870_v8 = vpop.f32.mrf.mxu2 }
 0x1d6   :  { %v871_v9 = vadd.f32 %v1589_v23, %v870_v8 }
 0x1d8   :  { %v922_v11 = vmax.f32 %v871_v9, 0.0 }
 0x1da   :  { %v1347_v12 = vpack.c.bf16 %v922_v11, %v921_v10 }
 0x1dc   :  { %1387 = vst [vmem:[#allocation9 + $0x48] sm:$0xff] %v1347_v12  }
 0x1dd   :  { %v873_v13 = vpop.f32.mrf.mxu2 }
 0x1de   :  { %v874_v14 = vadd.f32 %v1589_v23, %v873_v13 }
 0x1e0   :  { %v923_v16 = vmax.f32 %v874_v14, 0.0 }
 0x1e5   :  { %v875_v6 = vpop.f32.mrf.mxu2 }
 0x1e6   :  { %v876_v15 = vadd.f32 %v1589_v23, %v875_v6 }
 0x1e8   :  { %v924_v17 = vmax.f32 %v876_v15, 0.0 }
 0x1ea   :  { %v1352_v18 = vpack.c.bf16 %v924_v17, %v923_v16 }
 0x1ec   :  { %1388 = vst [vmem:[#allocation9 + $0x50] sm:$0xff] %v1352_v18  }
 0x1ed   :  { %v878_v19 = vpop.f32.mrf.mxu2 }
 0x1ee   :  { %v879_v20 = vadd.f32 %v1589_v23, %v878_v19 }
 0x1f0   :  { %v925_v24 = vmax.f32 %v879_v20, 0.0 }
 0x1f5   :  { %v880_v22 = vpop.f32.mrf.mxu2 }
 0x1f6   :  { %v881_v21 = vadd.f32 %v1589_v23, %v880_v22 }
 0x1f8   :  { %v926_v25 = vmax.f32 %v881_v21, 0.0 }
 0x1fa   :  { %v1357_v26 = vpack.c.bf16 %v926_v25, %v925_v24 }
 0x1fc   :  { %1389 = vst [vmem:[#allocation9 + $0x58] sm:$0xff] %v1357_v26  }
 0x1fd   :  { %1011 = dma.vmem_to_hbm [thread:$0]  %s1004_s7, 2048, %s1006_s10, [#allocation5], %s1530_s23, %s1530_s23, %s1531_s24  }
 0x1fe   :  { %1527 = dma.done.wait [#allocation5], 2048  }
 0x1ff   :  { %1528 = vsyncadd [#allocation5], 4294965248 }
 0x200   :  { %1016 = vsyncpa [#allocation4], 1 }
 0x201   :  { %1017 = vsyncpa [#allocation7], 1 }
 0x202   :  { %1018 = vsyncpa [#allocation5], 1 }

</bundles_post_ra>
